<compile_context>
chip_gen: v6e
topology: v6e:2x2x1
jax: 0.10.0
libtpu: 0.0.40
codegen_flags: <defaults>
</compile_context>

<pallas_src>
import jax
import jax.numpy as jnp
from jax.experimental import pallas as pl
from jax.experimental.pallas import tpu as pltpu


def _round_up(x, m):
    return (x + m - 1) // m * m


def _vmem_limit(need_bytes):
    # Explicit, generation-aware scoped-VMEM request:
    #   >= 16 MiB so we never silently rely on v5e's small default,
    #   <= 64 MiB so the request is physically satisfiable on v7x.
    return int(min(max(int(need_bytes * 1.5) + (2 << 20), 16 << 20), 64 << 20))


# --------------------------------------------------------------------------
# Kernel 1: single-layer LSTM over the whole sequence (grid-free).
# --------------------------------------------------------------------------
def _lstm_seq_kernel(x_ref, w_ih_ref, w_hh_ref, b_ref, hid_ref, pg_ref):
    # x_ref   : (T+1, Bp, Ep)   bf16  inputs (features ++ embeddings), padded
    # w_ih_ref: (Ep, 4*Hp)      bf16  input->gates weight  (gate order i,f,g,o)
    # w_hh_ref: (Hp, 4*Hp)      bf16  hidden->gates weight
    # b_ref   : (1, 4*Hp)       f32   b_ih + b_hh
    # hid_ref : (T+1, Bp, Hp)   bf16  hidden-state outputs
    # pg_ref  : (T+1, Bp, 4*Hp) f32   scratch: precomputed input pre-gates
    tp1, bp, ep = x_ref.shape
    hp = hid_ref.shape[-1]

    # Hoisted off the serial critical path: one tall lane-dense MXU matmul
    # computing x @ W_ih for all timesteps, with the bias folded in once.
    x_all = x_ref[...].reshape(tp1 * bp, ep)
    pg = jnp.dot(x_all, w_ih_ref[...], preferred_element_type=jnp.float32)
    pg_ref[...] = (pg + b_ref[...]).reshape(tp1, bp, 4 * hp)

    def step(t, carry):
        h, c = carry                                         # f32 (Bp, Hp)
        gates = pg_ref[t] + jnp.dot(h.astype(w_hh_ref.dtype), w_hh_ref[...],
                                    preferred_element_type=jnp.float32)
        # Hp is a multiple of 128 -> lane-aligned gate slices (no relayout).
        i_g = jax.nn.sigmoid(gates[:, 0 * hp:1 * hp])
        f_g = jax.nn.sigmoid(gates[:, 1 * hp:2 * hp])
        g_g = jnp.tanh(gates[:, 2 * hp:3 * hp])
        o_g = jax.nn.sigmoid(gates[:, 3 * hp:4 * hp])
        c_new = f_g * c + i_g * g_g
        h_new = o_g * jnp.tanh(c_new)
        hid_ref[t] = h_new.astype(hid_ref.dtype)             # store bf16, carry f32
        return h_new, c_new

    h0 = jnp.zeros((bp, hp), jnp.float32)
    c0 = jnp.zeros((bp, hp), jnp.float32)
    # Short sequences: full unroll for LLO visibility; long: partial unroll
    # keeps cross-step overlap without code blowup.
    jax.lax.fori_loop(0, tp1, step, (h0, c0),
                      unroll=(tp1 if tp1 <= 32 else 8))


# --------------------------------------------------------------------------
# Kernel 2: batched lane-dense output projection over all timesteps.
# --------------------------------------------------------------------------
def _proj_kernel(h_ref, w_ref, b_ref, o_ref):
    # h_ref: (M, Hp) bf16 (resident)  w_ref: (Hp, tv) bf16  b_ref: (1, tv) f32
    o_ref[...] = (jnp.dot(h_ref[...], w_ref[...],
                          preferred_element_type=jnp.float32)
                  + b_ref[...]).astype(o_ref.dtype)


# --------------------------------------------------------------------------
# Wrapper
# --------------------------------------------------------------------------
def decoder_rnn_forward(features, captions, params, *, compute_dtype=jnp.bfloat16):
    """features: (B, E) f32, captions: (T, B) int32 -> (T+1, B, V) f32."""
    embed_tbl = params["embed"]        # (V, E)
    w_ih = params["w_ih"]              # (E, 4H)   gate order [i,f,g,o]
    w_hh = params["w_hh"]              # (H, 4H)
    b = params["b"]                    # (1, 4H)   (b_ih + b_hh)
    w_out = params["w_out"]            # (H, V)
    b_out = params["b_out"]            # (1, V)

    T, B = captions.shape
    V, E = embed_tbl.shape
    H = w_hh.shape[0]
    Tp1 = T + 1
    itemsize = jnp.dtype(compute_dtype).itemsize

    # (8, 128) vreg-tile aligned padded sizes.
    B_pad = _round_up(B, 8)
    E_pad = _round_up(E, 128)
    H_pad = _round_up(H, 128)
    V_pad = _round_up(V, 128)

    # ---- plain-JAX glue: embedding gather, eval-mode dropout, concat, pad ----
    emb = jnp.take(embed_tbl, captions, axis=0)                  # (T, B, E)
    inputs = jnp.concatenate([features[None], emb], axis=0)      # (T+1, B, E)
    inputs = jnp.pad(inputs, ((0, 0), (0, B_pad - B), (0, E_pad - E)))
    inputs = inputs.astype(compute_dtype)

    # ---- pad weights (per-gate padding keeps gate blocks lane-aligned) ----
    def pad_gates(w, rows_pad):
        k = w.shape[0]
        w4 = w.reshape(k, 4, H)
        w4 = jnp.pad(w4, ((0, rows_pad - k), (0, 0), (0, H_pad - H)))
        return w4.reshape(rows_pad, 4 * H_pad)

    w_ih_p = pad_gates(w_ih, E_pad).astype(compute_dtype)       # (E_pad, 4*H_pad)
    w_hh_p = pad_gates(w_hh, H_pad).astype(compute_dtype)       # (H_pad, 4*H_pad)
    b_p = jnp.pad(b.reshape(1, 4, H),
                  ((0, 0), (0, 0), (0, H_pad - H))).reshape(1, 4 * H_pad)
    b_p = b_p.astype(jnp.float32)

    # ---- kernel 1: LSTM recurrence (single grid step, all in VMEM) ----
    lstm_vmem = (inputs.size * itemsize + w_ih_p.size * itemsize
                 + w_hh_p.size * itemsize + b_p.size * 4
                 + Tp1 * B_pad * H_pad * itemsize              # hidden out (bf16)
                 + Tp1 * B_pad * 4 * H_pad * 4)                # pre-gate scratch
    lstm_cost = pl.CostEstimate(
        flops=int(2 * Tp1 * B_pad * (E_pad + H_pad) * 4 * H_pad),
        transcendentals=int(5 * Tp1 * B_pad * H_pad),
        bytes_accessed=int(inputs.size * itemsize + w_ih_p.size * itemsize
                           + w_hh_p.size * itemsize + b_p.size * 4
                           + Tp1 * B_pad * H_pad * itemsize),
    )
    hidden = pl.pallas_call(
        _lstm_seq_kernel,
        out_shape=jax.ShapeDtypeStruct((Tp1, B_pad, H_pad), compute_dtype),
        in_specs=[pl.BlockSpec(memory_space=pltpu.MemorySpace.VMEM)] * 4,
        out_specs=pl.BlockSpec(memory_space=pltpu.MemorySpace.VMEM),
        scratch_shapes=[pltpu.VMEM((Tp1, B_pad, 4 * H_pad), jnp.float32)],
        compiler_params=pltpu.CompilerParams(
            vmem_limit_bytes=_vmem_limit(lstm_vmem)),
        cost_estimate=lstm_cost,
    )(inputs, w_ih_p, w_hh_p, b_p)

    # ---- kernel 2: batched projection, tiled over V ("parallel") ----
    M = Tp1 * B_pad
    hidden2d = hidden.reshape(M, H_pad)            # bf16 already, no cast pass

    # VMEM-budgeted V tile: largest of (1024, 512, 256) that fits a ~24 MiB
    # double-buffered budget and wastes <= 1/8 of V_pad in padding; else 128.
    budget = 24 << 20
    tv = 128
    for cand in (1024, 512, 256):
        if cand > V_pad:
            continue
        need = (2 * M * H_pad * itemsize           # resident activations
                + 2 * H_pad * cand * itemsize      # W_out tile double-buffer
                + 2 * cand * 4                     # bias tile double-buffer
                + 2 * M * cand * 4)                # output tile double-buffer
        if need <= budget and (_round_up(V_pad, cand) - V_pad) * 8 <= V_pad:
            tv = cand
            break
    V_proj = _round_up(V_pad, tv)                  # pad vocab to a tile multiple
    n_v = V_proj // tv

    w_out_p = jnp.pad(w_out, ((0, H_pad - H), (0, V_proj - V))).astype(compute_dtype)
    b_out_p = jnp.pad(b_out, ((0, 0), (0, V_proj - V))).astype(jnp.float32)

    proj_vmem = (2 * M * H_pad * itemsize + 2 * H_pad * tv * itemsize
                 + 2 * tv * 4 + 2 * M * tv * 4)
    proj_cost = pl.CostEstimate(
        flops=int(2 * M * H_pad * V_proj),
        transcendentals=0,
        bytes_accessed=int(M * H_pad * itemsize + H_pad * V_proj * itemsize
                           + V_proj * 4 + M * V_proj * 4),
    )
    # TODO(synk): if the W-tile DMA shows exposed in a trace, add
    # pipeline_mode=pl.Buffered(3) to the W_out BlockSpec.
    logits = pl.pallas_call(
        _proj_kernel,
        out_shape=jax.ShapeDtypeStruct((M, V_proj), jnp.float32),
        grid=(n_v,),
        in_specs=[
            pl.BlockSpec((M, H_pad), lambda j: (0, 0)),   # resident activations
            pl.BlockSpec((H_pad, tv), lambda j: (0, j)),  # W_out V-tile
            pl.BlockSpec((1, tv), lambda j: (0, j)),      # b_out V-tile
        ],
        out_specs=pl.BlockSpec((M, tv), lambda j: (0, j)),  # lane-dense stores
        compiler_params=pltpu.CompilerParams(
            dimension_semantics=("parallel",),
            vmem_limit_bytes=_vmem_limit(proj_vmem)),
        cost_estimate=proj_cost,
    )(hidden2d, w_out_p, b_out_p)

    return logits.reshape(Tp1, B_pad, V_proj)[:, :B, :V]


# --------------------------------------------------------------------------
# Pure-JAX reference (same bf16 matmul casts, f32 state) for correctness.
# --------------------------------------------------------------------------
def decoder_rnn_reference(features, captions, params, compute_dtype=jnp.bfloat16):
    emb = jnp.take(params["embed"], captions, axis=0)
    inputs = jnp.concatenate([features[None], emb], axis=0)
    B = features.shape[0]
    H = params["w_hh"].shape[0]
    w_ih = params["w_ih"].astype(compute_dtype)
    w_hh = params["w_hh"].astype(compute_dtype)
    w_out = params["w_out"].astype(compute_dtype)

    def step(carry, x):
        h, c = carry
        gates = (jnp.dot(x.astype(compute_dtype), w_ih,
                         preferred_element_type=jnp.float32)
                 + jnp.dot(h.astype(compute_dtype), w_hh,
                           preferred_element_type=jnp.float32)
                 + params["b"][0])
        i_g = jax.nn.sigmoid(gates[:, 0 * H:1 * H])
        f_g = jax.nn.sigmoid(gates[:, 1 * H:2 * H])
        g_g = jnp.tanh(gates[:, 2 * H:3 * H])
        o_g = jax.nn.sigmoid(gates[:, 3 * H:4 * H])
        c = f_g * c + i_g * g_g
        h = o_g * jnp.tanh(c)
        return (h, c), h

    init = (jnp.zeros((B, H), jnp.float32), jnp.zeros((B, H), jnp.float32))
    _, hidden = jax.lax.scan(step, init, inputs)
    return (jnp.dot(hidden.astype(compute_dtype), w_out,
                    preferred_element_type=jnp.float32) + params["b_out"][0])


def make_params(key, vocab_size, embed_size, hidden_size):
    ks = jax.random.split(key, 6)
    s = 0.1
    return {
        "embed": jax.random.normal(ks[0], (vocab_size, embed_size), jnp.float32) * s,
        "w_ih": jax.random.normal(ks[1], (embed_size, 4 * hidden_size), jnp.float32) * s,
        "w_hh": jax.random.normal(ks[2], (hidden_size, 4 * hidden_size), jnp.float32) * s,
        "b": jax.random.normal(ks[3], (1, 4 * hidden_size), jnp.float32) * s,
        "w_out": jax.random.normal(ks[4], (hidden_size, vocab_size), jnp.float32) * s,
        "b_out": jax.random.normal(ks[5], (1, vocab_size), jnp.float32) * s,
    }


if __name__ == "__main__":
    B, T = 4, 8
    embed_size, hidden_size, vocab_size = 32, 32, 128

    key = jax.random.PRNGKey(0)
    kp, kf, kc = jax.random.split(key, 3)

    params = make_params(kp, vocab_size, embed_size, hidden_size)
    features = jax.random.normal(kf, (B, embed_size), jnp.float32)
    captions = jax.random.randint(kc, (T, B), 0, vocab_size, jnp.int32)

    out = decoder_rnn_forward(features, captions, params)
    out = jax.block_until_ready(out)

    ref = decoder_rnn_reference(features, captions, params)
    assert out.shape == (T + 1, B, vocab_size)
    err = float(jnp.max(jnp.abs(out - ref)))
    assert jnp.allclose(out, ref, atol=1e-2, rtol=1e-2), f"max abs err {err}"

    print("KERNEL_OK")
</pallas_src>

<mosaic_0001>
module attributes {stable_mosaic.version = 11 : i64} {
  func.func @_lstm_seq_kernel(%arg0: memref<9x8x128xbf16, #tpu.memory_space<vmem>>, %arg1: memref<128x512xbf16, #tpu.memory_space<vmem>>, %arg2: memref<128x512xbf16, #tpu.memory_space<vmem>>, %arg3: memref<1x512xf32, #tpu.memory_space<vmem>>, %arg4: memref<9x8x128xbf16, #tpu.memory_space<vmem>>, %arg5: memref<9x8x512xf32, #tpu.memory_space<vmem>>) attributes {dimension_semantics = [], scalar_prefetch = 0 : i64, scratch_operands = 1 : i64, tpu.core_type = #tpu.core_type<tc>} {
    %c0 = arith.constant 0 : index
    %c0_0 = arith.constant 0 : index
    %c0_1 = arith.constant 0 : index
    %0 = vector.load %arg0[%c0, %c0_0, %c0_1] : memref<9x8x128xbf16, #tpu.memory_space<vmem>>, vector<9x8x128xbf16>
    %1 = vector.shape_cast %0 : vector<9x8x128xbf16> to vector<72x128xbf16>
    %c0_2 = arith.constant 0 : index
    %c0_3 = arith.constant 0 : index
    %2 = vector.load %arg1[%c0_2, %c0_3] : memref<128x512xbf16, #tpu.memory_space<vmem>>, vector<128x512xbf16>
    %cst = arith.constant dense<0.000000e+00> : vector<72x512xf32>
    %3 = tpu.matmul %1, %2, %cst {dimension_numbers = #tpu.dot_dimension_numbers<[1], [0], [0], [1], [0, 0, 1, 1], [], []>} : vector<72x128xbf16>, vector<128x512xbf16>, vector<72x512xf32> -> vector<72x512xf32>
    %c0_4 = arith.constant 0 : index
    %c0_5 = arith.constant 0 : index
    %4 = vector.load %arg3[%c0_4, %c0_5] : memref<1x512xf32, #tpu.memory_space<vmem>>, vector<1x512xf32>
    %5 = vector.broadcast %4 : vector<1x512xf32> to vector<72x512xf32>
    %6 = arith.addf %3, %5 : vector<72x512xf32>
    %7 = vector.shape_cast %6 : vector<72x512xf32> to vector<9x8x512xf32>
    %c0_6 = arith.constant 0 : index
    %c0_7 = arith.constant 0 : index
    %c0_8 = arith.constant 0 : index
    %8 = vector.load %arg5[%c0_6, %c0_7, %c0_8] : memref<9x8x512xf32, #tpu.memory_space<vmem>>, vector<9x8x512xf32>
    tpu.vector_store %arg5[%c0_6, %c0_7, %c0_8], %7 {strides = array<i32>} : memref<9x8x512xf32, #tpu.memory_space<vmem>>, vector<9x8x512xf32>,
    %cst_9 = arith.constant 0.000000e+00 : f32
    %9 = vector.broadcast %cst_9 : f32 to vector<8x128xf32>
    %cst_10 = arith.constant 0.000000e+00 : f32
    %10 = vector.broadcast %cst_10 : f32 to vector<8x128xf32>
    %c0_i32 = arith.constant 0 : i32
    %11 = arith.index_cast %c0_i32 : i32 to index
    %c0_11 = arith.constant 0 : index
    %c0_12 = arith.constant 0 : index
    %12 = vector.load %arg5[%11, %c0_11, %c0_12] : memref<9x8x512xf32, #tpu.memory_space<vmem>>, vector<1x8x512xf32>
    %13 = vector.shape_cast %12 : vector<1x8x512xf32> to vector<8x512xf32>
    %14 = arith.truncf %9 : vector<8x128xf32> to vector<8x128xbf16>
    %c0_13 = arith.constant 0 : index
    %c0_14 = arith.constant 0 : index
    %15 = vector.load %arg2[%c0_13, %c0_14] : memref<128x512xbf16, #tpu.memory_space<vmem>>, vector<128x512xbf16>
    %cst_15 = arith.constant dense<0.000000e+00> : vector<8x512xf32>
    %16 = tpu.matmul %14, %15, %cst_15 {dimension_numbers = #tpu.dot_dimension_numbers<[1], [0], [0], [1], [0, 0, 1, 1], [], []>} : vector<8x128xbf16>, vector<128x512xbf16>, vector<8x512xf32> -> vector<8x512xf32>
    %17 = arith.addf %13, %16 : vector<8x512xf32>
    %18 = vector.extract_strided_slice %17 {offsets = [0, 0], sizes = [8, 128], strides = [1, 1]} : vector<8x512xf32> to vector<8x128xf32>
    %19 = arith.negf %18 : vector<8x128xf32>
    %20 = math.exp %19 : vector<8x128xf32>
    %cst_16 = arith.constant 1.000000e+00 : f32
    %21 = vector.broadcast %cst_16 : f32 to vector<8x128xf32>
    %22 = arith.addf %21, %20 : vector<8x128xf32>
    %23 = arith.divf %21, %22 : vector<8x128xf32>
    %24 = vector.extract_strided_slice %17 {offsets = [0, 128], sizes = [8, 128], strides = [1, 1]} : vector<8x512xf32> to vector<8x128xf32>
    %25 = arith.negf %24 : vector<8x128xf32>
    %26 = math.exp %25 : vector<8x128xf32>
    %cst_17 = arith.constant 1.000000e+00 : f32
    %27 = vector.broadcast %cst_17 : f32 to vector<8x128xf32>
    %28 = arith.addf %27, %26 : vector<8x128xf32>
    %29 = arith.divf %27, %28 : vector<8x128xf32>
    %30 = vector.extract_strided_slice %17 {offsets = [0, 256], sizes = [8, 128], strides = [1, 1]} : vector<8x512xf32> to vector<8x128xf32>
    %31 = math.tanh %30 : vector<8x128xf32>
    %32 = vector.extract_strided_slice %17 {offsets = [0, 384], sizes = [8, 128], strides = [1, 1]} : vector<8x512xf32> to vector<8x128xf32>
    %33 = arith.negf %32 : vector<8x128xf32>
    %34 = math.exp %33 : vector<8x128xf32>
    %cst_18 = arith.constant 1.000000e+00 : f32
    %35 = vector.broadcast %cst_18 : f32 to vector<8x128xf32>
    %36 = arith.addf %35, %34 : vector<8x128xf32>
    %37 = arith.divf %35, %36 : vector<8x128xf32>
    %38 = arith.mulf %29, %10 : vector<8x128xf32>
    %39 = arith.mulf %23, %31 : vector<8x128xf32>
    %40 = arith.addf %38, %39 : vector<8x128xf32>
    %41 = math.tanh %40 : vector<8x128xf32>
    %42 = arith.mulf %37, %41 : vector<8x128xf32>
    %43 = arith.truncf %42 : vector<8x128xf32> to vector<8x128xbf16>
    %44 = arith.index_cast %c0_i32 : i32 to index
    %c0_19 = arith.constant 0 : index
    %c0_20 = arith.constant 0 : index
    %45 = vector.load %arg4[%44, %c0_19, %c0_20] : memref<9x8x128xbf16, #tpu.memory_space<vmem>>, vector<1x8x128xbf16>
    %46 = vector.shape_cast %45 : vector<1x8x128xbf16> to vector<8x128xbf16>
    %47 = vector.shape_cast %43 : vector<8x128xbf16> to vector<1x8x128xbf16>
    tpu.vector_store %arg4[%44, %c0_19, %c0_20], %47 {strides = array<i32>} : memref<9x8x128xbf16, #tpu.memory_space<vmem>>, vector<1x8x128xbf16>,
    %c1_i32 = arith.constant 1 : i32
    %48 = arith.index_cast %c1_i32 : i32 to index
    %c0_21 = arith.constant 0 : index
    %c0_22 = arith.constant 0 : index
    %49 = vector.load %arg5[%48, %c0_21, %c0_22] : memref<9x8x512xf32, #tpu.memory_space<vmem>>, vector<1x8x512xf32>
    %50 = vector.shape_cast %49 : vector<1x8x512xf32> to vector<8x512xf32>
    %51 = arith.truncf %42 : vector<8x128xf32> to vector<8x128xbf16>
    %c0_23 = arith.constant 0 : index
    %c0_24 = arith.constant 0 : index
    %52 = vector.load %arg2[%c0_23, %c0_24] : memref<128x512xbf16, #tpu.memory_space<vmem>>, vector<128x512xbf16>
    %cst_25 = arith.constant dense<0.000000e+00> : vector<8x512xf32>
    %53 = tpu.matmul %51, %52, %cst_25 {dimension_numbers = #tpu.dot_dimension_numbers<[1], [0], [0], [1], [0, 0, 1, 1], [], []>} : vector<8x128xbf16>, vector<128x512xbf16>, vector<8x512xf32> -> vector<8x512xf32>
    %54 = arith.addf %50, %53 : vector<8x512xf32>
    %55 = vector.extract_strided_slice %54 {offsets = [0, 0], sizes = [8, 128], strides = [1, 1]} : vector<8x512xf32> to vector<8x128xf32>
    %56 = arith.negf %55 : vector<8x128xf32>
    %57 = math.exp %56 : vector<8x128xf32>
    %cst_26 = arith.constant 1.000000e+00 : f32
    %58 = vector.broadcast %cst_26 : f32 to vector<8x128xf32>
    %59 = arith.addf %58, %57 : vector<8x128xf32>
    %60 = arith.divf %58, %59 : vector<8x128xf32>
    %61 = vector.extract_strided_slice %54 {offsets = [0, 128], sizes = [8, 128], strides = [1, 1]} : vector<8x512xf32> to vector<8x128xf32>
    %62 = arith.negf %61 : vector<8x128xf32>
    %63 = math.exp %62 : vector<8x128xf32>
    %cst_27 = arith.constant 1.000000e+00 : f32
    %64 = vector.broadcast %cst_27 : f32 to vector<8x128xf32>
    %65 = arith.addf %64, %63 : vector<8x128xf32>
    %66 = arith.divf %64, %65 : vector<8x128xf32>
    %67 = vector.extract_strided_slice %54 {offsets = [0, 256], sizes = [8, 128], strides = [1, 1]} : vector<8x512xf32> to vector<8x128xf32>
    %68 = math.tanh %67 : vector<8x128xf32>
    %69 = vector.extract_strided_slice %54 {offsets = [0, 384], sizes = [8, 128], strides = [1, 1]} : vector<8x512xf32> to vector<8x128xf32>
    %70 = arith.negf %69 : vector<8x128xf32>
    %71 = math.exp %70 : vector<8x128xf32>
    %cst_28 = arith.constant 1.000000e+00 : f32
    %72 = vector.broadcast %cst_28 : f32 to vector<8x128xf32>
    %73 = arith.addf %72, %71 : vector<8x128xf32>
    %74 = arith.divf %72, %73 : vector<8x128xf32>
    %75 = arith.mulf %66, %40 : vector<8x128xf32>
    %76 = arith.mulf %60, %68 : vector<8x128xf32>
    %77 = arith.addf %75, %76 : vector<8x128xf32>
    %78 = math.tanh %77 : vector<8x128xf32>
    %79 = arith.mulf %74, %78 : vector<8x128xf32>
    %80 = arith.truncf %79 : vector<8x128xf32> to vector<8x128xbf16>
    %81 = arith.index_cast %c1_i32 : i32 to index
    %c0_29 = arith.constant 0 : index
    %c0_30 = arith.constant 0 : index
    %82 = vector.load %arg4[%81, %c0_29, %c0_30] : memref<9x8x128xbf16, #tpu.memory_space<vmem>>, vector<1x8x128xbf16>
    %83 = vector.shape_cast %82 : vector<1x8x128xbf16> to vector<8x128xbf16>
    %84 = vector.shape_cast %80 : vector<8x128xbf16> to vector<1x8x128xbf16>
    tpu.vector_store %arg4[%81, %c0_29, %c0_30], %84 {strides = array<i32>} : memref<9x8x128xbf16, #tpu.memory_space<vmem>>, vector<1x8x128xbf16>,
    %c2_i32 = arith.constant 2 : i32
    %85 = arith.index_cast %c2_i32 : i32 to index
    %c0_31 = arith.constant 0 : index
    %c0_32 = arith.constant 0 : index
    %86 = vector.load %arg5[%85, %c0_31, %c0_32] : memref<9x8x512xf32, #tpu.memory_space<vmem>>, vector<1x8x512xf32>
    %87 = vector.shape_cast %86 : vector<1x8x512xf32> to vector<8x512xf32>
    %88 = arith.truncf %79 : vector<8x128xf32> to vector<8x128xbf16>
    %c0_33 = arith.constant 0 : index
    %c0_34 = arith.constant 0 : index
    %89 = vector.load %arg2[%c0_33, %c0_34] : memref<128x512xbf16, #tpu.memory_space<vmem>>, vector<128x512xbf16>
    %cst_35 = arith.constant dense<0.000000e+00> : vector<8x512xf32>
    %90 = tpu.matmul %88, %89, %cst_35 {dimension_numbers = #tpu.dot_dimension_numbers<[1], [0], [0], [1], [0, 0, 1, 1], [], []>} : vector<8x128xbf16>, vector<128x512xbf16>, vector<8x512xf32> -> vector<8x512xf32>
    %91 = arith.addf %87, %90 : vector<8x512xf32>
    %92 = vector.extract_strided_slice %91 {offsets = [0, 0], sizes = [8, 128], strides = [1, 1]} : vector<8x512xf32> to vector<8x128xf32>
    %93 = arith.negf %92 : vector<8x128xf32>
    %94 = math.exp %93 : vector<8x128xf32>
    %cst_36 = arith.constant 1.000000e+00 : f32
    %95 = vector.broadcast %cst_36 : f32 to vector<8x128xf32>
    %96 = arith.addf %95, %94 : vector<8x128xf32>
    %97 = arith.divf %95, %96 : vector<8x128xf32>
    %98 = vector.extract_strided_slice %91 {offsets = [0, 128], sizes = [8, 128], strides = [1, 1]} : vector<8x512xf32> to vector<8x128xf32>
    %99 = arith.negf %98 : vector<8x128xf32>
    %100 = math.exp %99 : vector<8x128xf32>
    %cst_37 = arith.constant 1.000000e+00 : f32
    %101 = vector.broadcast %cst_37 : f32 to vector<8x128xf32>
    %102 = arith.addf %101, %100 : vector<8x128xf32>
    %103 = arith.divf %101, %102 : vector<8x128xf32>
    %104 = vector.extract_strided_slice %91 {offsets = [0, 256], sizes = [8, 128], strides = [1, 1]} : vector<8x512xf32> to vector<8x128xf32>
    %105 = math.tanh %104 : vector<8x128xf32>
    %106 = vector.extract_strided_slice %91 {offsets = [0, 384], sizes = [8, 128], strides = [1, 1]} : vector<8x512xf32> to vector<8x128xf32>
    %107 = arith.negf %106 : vector<8x128xf32>
    %108 = math.exp %107 : vector<8x128xf32>
    %cst_38 = arith.constant 1.000000e+00 : f32
    %109 = vector.broadcast %cst_38 : f32 to vector<8x128xf32>
    %110 = arith.addf %109, %108 : vector<8x128xf32>
    %111 = arith.divf %109, %110 : vector<8x128xf32>
    %112 = arith.mulf %103, %77 : vector<8x128xf32>
    %113 = arith.mulf %97, %105 : vector<8x128xf32>
    %114 = arith.addf %112, %113 : vector<8x128xf32>
    %115 = math.tanh %114 : vector<8x128xf32>
    %116 = arith.mulf %111, %115 : vector<8x128xf32>
    %117 = arith.truncf %116 : vector<8x128xf32> to vector<8x128xbf16>
    %118 = arith.index_cast %c2_i32 : i32 to index
    %c0_39 = arith.constant 0 : index
    %c0_40 = arith.constant 0 : index
    %119 = vector.load %arg4[%118, %c0_39, %c0_40] : memref<9x8x128xbf16, #tpu.memory_space<vmem>>, vector<1x8x128xbf16>
    %120 = vector.shape_cast %119 : vector<1x8x128xbf16> to vector<8x128xbf16>
    %121 = vector.shape_cast %117 : vector<8x128xbf16> to vector<1x8x128xbf16>
    tpu.vector_store %arg4[%118, %c0_39, %c0_40], %121 {strides = array<i32>} : memref<9x8x128xbf16, #tpu.memory_space<vmem>>, vector<1x8x128xbf16>,
    %c3_i32 = arith.constant 3 : i32
    %122 = arith.index_cast %c3_i32 : i32 to index
    %c0_41 = arith.constant 0 : index
    %c0_42 = arith.constant 0 : index
    %123 = vector.load %arg5[%122, %c0_41, %c0_42] : memref<9x8x512xf32, #tpu.memory_space<vmem>>, vector<1x8x512xf32>
    %124 = vector.shape_cast %123 : vector<1x8x512xf32> to vector<8x512xf32>
    %125 = arith.truncf %116 : vector<8x128xf32> to vector<8x128xbf16>
    %c0_43 = arith.constant 0 : index
    %c0_44 = arith.constant 0 : index
    %126 = vector.load %arg2[%c0_43, %c0_44] : memref<128x512xbf16, #tpu.memory_space<vmem>>, vector<128x512xbf16>
    %cst_45 = arith.constant dense<0.000000e+00> : vector<8x512xf32>
    %127 = tpu.matmul %125, %126, %cst_45 {dimension_numbers = #tpu.dot_dimension_numbers<[1], [0], [0], [1], [0, 0, 1, 1], [], []>} : vector<8x128xbf16>, vector<128x512xbf16>, vector<8x512xf32> -> vector<8x512xf32>
    %128 = arith.addf %124, %127 : vector<8x512xf32>
    %129 = vector.extract_strided_slice %128 {offsets = [0, 0], sizes = [8, 128], strides = [1, 1]} : vector<8x512xf32> to vector<8x128xf32>
    %130 = arith.negf %129 : vector<8x128xf32>
    %131 = math.exp %130 : vector<8x128xf32>
    %cst_46 = arith.constant 1.000000e+00 : f32
    %132 = vector.broadcast %cst_46 : f32 to vector<8x128xf32>
    %133 = arith.addf %132, %131 : vector<8x128xf32>
    %134 = arith.divf %132, %133 : vector<8x128xf32>
    %135 = vector.extract_strided_slice %128 {offsets = [0, 128], sizes = [8, 128], strides = [1, 1]} : vector<8x512xf32> to vector<8x128xf32>
    %136 = arith.negf %135 : vector<8x128xf32>
    %137 = math.exp %136 : vector<8x128xf32>
    %cst_47 = arith.constant 1.000000e+00 : f32
    %138 = vector.broadcast %cst_47 : f32 to vector<8x128xf32>
    %139 = arith.addf %138, %137 : vector<8x128xf32>
    %140 = arith.divf %138, %139 : vector<8x128xf32>
    %141 = vector.extract_strided_slice %128 {offsets = [0, 256], sizes = [8, 128], strides = [1, 1]} : vector<8x512xf32> to vector<8x128xf32>
    %142 = math.tanh %141 : vector<8x128xf32>
    %143 = vector.extract_strided_slice %128 {offsets = [0, 384], sizes = [8, 128], strides = [1, 1]} : vector<8x512xf32> to vector<8x128xf32>
    %144 = arith.negf %143 : vector<8x128xf32>
    %145 = math.exp %144 : vector<8x128xf32>
    %cst_48 = arith.constant 1.000000e+00 : f32
    %146 = vector.broadcast %cst_48 : f32 to vector<8x128xf32>
    %147 = arith.addf %146, %145 : vector<8x128xf32>
    %148 = arith.divf %146, %147 : vector<8x128xf32>
    %149 = arith.mulf %140, %114 : vector<8x128xf32>
    %150 = arith.mulf %134, %142 : vector<8x128xf32>
    %151 = arith.addf %149, %150 : vector<8x128xf32>
    %152 = math.tanh %151 : vector<8x128xf32>
    %153 = arith.mulf %148, %152 : vector<8x128xf32>
    %154 = arith.truncf %153 : vector<8x128xf32> to vector<8x128xbf16>
    %155 = arith.index_cast %c3_i32 : i32 to index
    %c0_49 = arith.constant 0 : index
    %c0_50 = arith.constant 0 : index
    %156 = vector.load %arg4[%155, %c0_49, %c0_50] : memref<9x8x128xbf16, #tpu.memory_space<vmem>>, vector<1x8x128xbf16>
    %157 = vector.shape_cast %156 : vector<1x8x128xbf16> to vector<8x128xbf16>
    %158 = vector.shape_cast %154 : vector<8x128xbf16> to vector<1x8x128xbf16>
    tpu.vector_store %arg4[%155, %c0_49, %c0_50], %158 {strides = array<i32>} : memref<9x8x128xbf16, #tpu.memory_space<vmem>>, vector<1x8x128xbf16>,
    %c4_i32 = arith.constant 4 : i32
    %159 = arith.index_cast %c4_i32 : i32 to index
    %c0_51 = arith.constant 0 : index
    %c0_52 = arith.constant 0 : index
    %160 = vector.load %arg5[%159, %c0_51, %c0_52] : memref<9x8x512xf32, #tpu.memory_space<vmem>>, vector<1x8x512xf32>
    %161 = vector.shape_cast %160 : vector<1x8x512xf32> to vector<8x512xf32>
    %162 = arith.truncf %153 : vector<8x128xf32> to vector<8x128xbf16>
    %c0_53 = arith.constant 0 : index
    %c0_54 = arith.constant 0 : index
    %163 = vector.load %arg2[%c0_53, %c0_54] : memref<128x512xbf16, #tpu.memory_space<vmem>>, vector<128x512xbf16>
    %cst_55 = arith.constant dense<0.000000e+00> : vector<8x512xf32>
    %164 = tpu.matmul %162, %163, %cst_55 {dimension_numbers = #tpu.dot_dimension_numbers<[1], [0], [0], [1], [0, 0, 1, 1], [], []>} : vector<8x128xbf16>, vector<128x512xbf16>, vector<8x512xf32> -> vector<8x512xf32>
    %165 = arith.addf %161, %164 : vector<8x512xf32>
    %166 = vector.extract_strided_slice %165 {offsets = [0, 0], sizes = [8, 128], strides = [1, 1]} : vector<8x512xf32> to vector<8x128xf32>
    %167 = arith.negf %166 : vector<8x128xf32>
    %168 = math.exp %167 : vector<8x128xf32>
    %cst_56 = arith.constant 1.000000e+00 : f32
    %169 = vector.broadcast %cst_56 : f32 to vector<8x128xf32>
    %170 = arith.addf %169, %168 : vector<8x128xf32>
    %171 = arith.divf %169, %170 : vector<8x128xf32>
    %172 = vector.extract_strided_slice %165 {offsets = [0, 128], sizes = [8, 128], strides = [1, 1]} : vector<8x512xf32> to vector<8x128xf32>
    %173 = arith.negf %172 : vector<8x128xf32>
    %174 = math.exp %173 : vector<8x128xf32>
    %cst_57 = arith.constant 1.000000e+00 : f32
    %175 = vector.broadcast %cst_57 : f32 to vector<8x128xf32>
    %176 = arith.addf %175, %174 : vector<8x128xf32>
    %177 = arith.divf %175, %176 : vector<8x128xf32>
    %178 = vector.extract_strided_slice %165 {offsets = [0, 256], sizes = [8, 128], strides = [1, 1]} : vector<8x512xf32> to vector<8x128xf32>
    %179 = math.tanh %178 : vector<8x128xf32>
    %180 = vector.extract_strided_slice %165 {offsets = [0, 384], sizes = [8, 128], strides = [1, 1]} : vector<8x512xf32> to vector<8x128xf32>
    %181 = arith.negf %180 : vector<8x128xf32>
    %182 = math.exp %181 : vector<8x128xf32>
    %cst_58 = arith.constant 1.000000e+00 : f32
    %183 = vector.broadcast %cst_58 : f32 to vector<8x128xf32>
    %184 = arith.addf %183, %182 : vector<8x128xf32>
    %185 = arith.divf %183, %184 : vector<8x128xf32>
    %186 = arith.mulf %177, %151 : vector<8x128xf32>
    %187 = arith.mulf %171, %179 : vector<8x128xf32>
    %188 = arith.addf %186, %187 : vector<8x128xf32>
    %189 = math.tanh %188 : vector<8x128xf32>
    %190 = arith.mulf %185, %189 : vector<8x128xf32>
    %191 = arith.truncf %190 : vector<8x128xf32> to vector<8x128xbf16>
    %192 = arith.index_cast %c4_i32 : i32 to index
    %c0_59 = arith.constant 0 : index
    %c0_60 = arith.constant 0 : index
    %193 = vector.load %arg4[%192, %c0_59, %c0_60] : memref<9x8x128xbf16, #tpu.memory_space<vmem>>, vector<1x8x128xbf16>
    %194 = vector.shape_cast %193 : vector<1x8x128xbf16> to vector<8x128xbf16>
    %195 = vector.shape_cast %191 : vector<8x128xbf16> to vector<1x8x128xbf16>
    tpu.vector_store %arg4[%192, %c0_59, %c0_60], %195 {strides = array<i32>} : memref<9x8x128xbf16, #tpu.memory_space<vmem>>, vector<1x8x128xbf16>,
    %c5_i32 = arith.constant 5 : i32
    %196 = arith.index_cast %c5_i32 : i32 to index
    %c0_61 = arith.constant 0 : index
    %c0_62 = arith.constant 0 : index
    %197 = vector.load %arg5[%196, %c0_61, %c0_62] : memref<9x8x512xf32, #tpu.memory_space<vmem>>, vector<1x8x512xf32>
    %198 = vector.shape_cast %197 : vector<1x8x512xf32> to vector<8x512xf32>
    %199 = arith.truncf %190 : vector<8x128xf32> to vector<8x128xbf16>
    %c0_63 = arith.constant 0 : index
    %c0_64 = arith.constant 0 : index
    %200 = vector.load %arg2[%c0_63, %c0_64] : memref<128x512xbf16, #tpu.memory_space<vmem>>, vector<128x512xbf16>
    %cst_65 = arith.constant dense<0.000000e+00> : vector<8x512xf32>
    %201 = tpu.matmul %199, %200, %cst_65 {dimension_numbers = #tpu.dot_dimension_numbers<[1], [0], [0], [1], [0, 0, 1, 1], [], []>} : vector<8x128xbf16>, vector<128x512xbf16>, vector<8x512xf32> -> vector<8x512xf32>
    %202 = arith.addf %198, %201 : vector<8x512xf32>
    %203 = vector.extract_strided_slice %202 {offsets = [0, 0], sizes = [8, 128], strides = [1, 1]} : vector<8x512xf32> to vector<8x128xf32>
    %204 = arith.negf %203 : vector<8x128xf32>
    %205 = math.exp %204 : vector<8x128xf32>
    %cst_66 = arith.constant 1.000000e+00 : f32
    %206 = vector.broadcast %cst_66 : f32 to vector<8x128xf32>
    %207 = arith.addf %206, %205 : vector<8x128xf32>
    %208 = arith.divf %206, %207 : vector<8x128xf32>
    %209 = vector.extract_strided_slice %202 {offsets = [0, 128], sizes = [8, 128], strides = [1, 1]} : vector<8x512xf32> to vector<8x128xf32>
    %210 = arith.negf %209 : vector<8x128xf32>
    %211 = math.exp %210 : vector<8x128xf32>
    %cst_67 = arith.constant 1.000000e+00 : f32
    %212 = vector.broadcast %cst_67 : f32 to vector<8x128xf32>
    %213 = arith.addf %212, %211 : vector<8x128xf32>
    %214 = arith.divf %212, %213 : vector<8x128xf32>
    %215 = vector.extract_strided_slice %202 {offsets = [0, 256], sizes = [8, 128], strides = [1, 1]} : vector<8x512xf32> to vector<8x128xf32>
    %216 = math.tanh %215 : vector<8x128xf32>
    %217 = vector.extract_strided_slice %202 {offsets = [0, 384], sizes = [8, 128], strides = [1, 1]} : vector<8x512xf32> to vector<8x128xf32>
    %218 = arith.negf %217 : vector<8x128xf32>
    %219 = math.exp %218 : vector<8x128xf32>
    %cst_68 = arith.constant 1.000000e+00 : f32
    %220 = vector.broadcast %cst_68 : f32 to vector<8x128xf32>
    %221 = arith.addf %220, %219 : vector<8x128xf32>
    %222 = arith.divf %220, %221 : vector<8x128xf32>
    %223 = arith.mulf %214, %188 : vector<8x128xf32>
    %224 = arith.mulf %208, %216 : vector<8x128xf32>
    %225 = arith.addf %223, %224 : vector<8x128xf32>
    %226 = math.tanh %225 : vector<8x128xf32>
    %227 = arith.mulf %222, %226 : vector<8x128xf32>
    %228 = arith.truncf %227 : vector<8x128xf32> to vector<8x128xbf16>
    %229 = arith.index_cast %c5_i32 : i32 to index
    %c0_69 = arith.constant 0 : index
    %c0_70 = arith.constant 0 : index
    %230 = vector.load %arg4[%229, %c0_69, %c0_70] : memref<9x8x128xbf16, #tpu.memory_space<vmem>>, vector<1x8x128xbf16>
    %231 = vector.shape_cast %230 : vector<1x8x128xbf16> to vector<8x128xbf16>
    %232 = vector.shape_cast %228 : vector<8x128xbf16> to vector<1x8x128xbf16>
    tpu.vector_store %arg4[%229, %c0_69, %c0_70], %232 {strides = array<i32>} : memref<9x8x128xbf16, #tpu.memory_space<vmem>>, vector<1x8x128xbf16>,
    %c6_i32 = arith.constant 6 : i32
    %233 = arith.index_cast %c6_i32 : i32 to index
    %c0_71 = arith.constant 0 : index
    %c0_72 = arith.constant 0 : index
    %234 = vector.load %arg5[%233, %c0_71, %c0_72] : memref<9x8x512xf32, #tpu.memory_space<vmem>>, vector<1x8x512xf32>
    %235 = vector.shape_cast %234 : vector<1x8x512xf32> to vector<8x512xf32>
    %236 = arith.truncf %227 : vector<8x128xf32> to vector<8x128xbf16>
    %c0_73 = arith.constant 0 : index
    %c0_74 = arith.constant 0 : index
    %237 = vector.load %arg2[%c0_73, %c0_74] : memref<128x512xbf16, #tpu.memory_space<vmem>>, vector<128x512xbf16>
    %cst_75 = arith.constant dense<0.000000e+00> : vector<8x512xf32>
    %238 = tpu.matmul %236, %237, %cst_75 {dimension_numbers = #tpu.dot_dimension_numbers<[1], [0], [0], [1], [0, 0, 1, 1], [], []>} : vector<8x128xbf16>, vector<128x512xbf16>, vector<8x512xf32> -> vector<8x512xf32>
    %239 = arith.addf %235, %238 : vector<8x512xf32>
    %240 = vector.extract_strided_slice %239 {offsets = [0, 0], sizes = [8, 128], strides = [1, 1]} : vector<8x512xf32> to vector<8x128xf32>
    %241 = arith.negf %240 : vector<8x128xf32>
    %242 = math.exp %241 : vector<8x128xf32>
    %cst_76 = arith.constant 1.000000e+00 : f32
    %243 = vector.broadcast %cst_76 : f32 to vector<8x128xf32>
    %244 = arith.addf %243, %242 : vector<8x128xf32>
    %245 = arith.divf %243, %244 : vector<8x128xf32>
    %246 = vector.extract_strided_slice %239 {offsets = [0, 128], sizes = [8, 128], strides = [1, 1]} : vector<8x512xf32> to vector<8x128xf32>
    %247 = arith.negf %246 : vector<8x128xf32>
    %248 = math.exp %247 : vector<8x128xf32>
    %cst_77 = arith.constant 1.000000e+00 : f32
    %249 = vector.broadcast %cst_77 : f32 to vector<8x128xf32>
    %250 = arith.addf %249, %248 : vector<8x128xf32>
    %251 = arith.divf %249, %250 : vector<8x128xf32>
    %252 = vector.extract_strided_slice %239 {offsets = [0, 256], sizes = [8, 128], strides = [1, 1]} : vector<8x512xf32> to vector<8x128xf32>
    %253 = math.tanh %252 : vector<8x128xf32>
    %254 = vector.extract_strided_slice %239 {offsets = [0, 384], sizes = [8, 128], strides = [1, 1]} : vector<8x512xf32> to vector<8x128xf32>
    %255 = arith.negf %254 : vector<8x128xf32>
    %256 = math.exp %255 : vector<8x128xf32>
    %cst_78 = arith.constant 1.000000e+00 : f32
    %257 = vector.broadcast %cst_78 : f32 to vector<8x128xf32>
    %258 = arith.addf %257, %256 : vector<8x128xf32>
    %259 = arith.divf %257, %258 : vector<8x128xf32>
    %260 = arith.mulf %251, %225 : vector<8x128xf32>
    %261 = arith.mulf %245, %253 : vector<8x128xf32>
    %262 = arith.addf %260, %261 : vector<8x128xf32>
    %263 = math.tanh %262 : vector<8x128xf32>
    %264 = arith.mulf %259, %263 : vector<8x128xf32>
    %265 = arith.truncf %264 : vector<8x128xf32> to vector<8x128xbf16>
    %266 = arith.index_cast %c6_i32 : i32 to index
    %c0_79 = arith.constant 0 : index
    %c0_80 = arith.constant 0 : index
    %267 = vector.load %arg4[%266, %c0_79, %c0_80] : memref<9x8x128xbf16, #tpu.memory_space<vmem>>, vector<1x8x128xbf16>
    %268 = vector.shape_cast %267 : vector<1x8x128xbf16> to vector<8x128xbf16>
    %269 = vector.shape_cast %265 : vector<8x128xbf16> to vector<1x8x128xbf16>
    tpu.vector_store %arg4[%266, %c0_79, %c0_80], %269 {strides = array<i32>} : memref<9x8x128xbf16, #tpu.memory_space<vmem>>, vector<1x8x128xbf16>,
    %c7_i32 = arith.constant 7 : i32
    %270 = arith.index_cast %c7_i32 : i32 to index
    %c0_81 = arith.constant 0 : index
    %c0_82 = arith.constant 0 : index
    %271 = vector.load %arg5[%270, %c0_81, %c0_82] : memref<9x8x512xf32, #tpu.memory_space<vmem>>, vector<1x8x512xf32>
    %272 = vector.shape_cast %271 : vector<1x8x512xf32> to vector<8x512xf32>
    %273 = arith.truncf %264 : vector<8x128xf32> to vector<8x128xbf16>
    %c0_83 = arith.constant 0 : index
    %c0_84 = arith.constant 0 : index
    %274 = vector.load %arg2[%c0_83, %c0_84] : memref<128x512xbf16, #tpu.memory_space<vmem>>, vector<128x512xbf16>
    %cst_85 = arith.constant dense<0.000000e+00> : vector<8x512xf32>
    %275 = tpu.matmul %273, %274, %cst_85 {dimension_numbers = #tpu.dot_dimension_numbers<[1], [0], [0], [1], [0, 0, 1, 1], [], []>} : vector<8x128xbf16>, vector<128x512xbf16>, vector<8x512xf32> -> vector<8x512xf32>
    %276 = arith.addf %272, %275 : vector<8x512xf32>
    %277 = vector.extract_strided_slice %276 {offsets = [0, 0], sizes = [8, 128], strides = [1, 1]} : vector<8x512xf32> to vector<8x128xf32>
    %278 = arith.negf %277 : vector<8x128xf32>
    %279 = math.exp %278 : vector<8x128xf32>
    %cst_86 = arith.constant 1.000000e+00 : f32
    %280 = vector.broadcast %cst_86 : f32 to vector<8x128xf32>
    %281 = arith.addf %280, %279 : vector<8x128xf32>
    %282 = arith.divf %280, %281 : vector<8x128xf32>
    %283 = vector.extract_strided_slice %276 {offsets = [0, 128], sizes = [8, 128], strides = [1, 1]} : vector<8x512xf32> to vector<8x128xf32>
    %284 = arith.negf %283 : vector<8x128xf32>
    %285 = math.exp %284 : vector<8x128xf32>
    %cst_87 = arith.constant 1.000000e+00 : f32
    %286 = vector.broadcast %cst_87 : f32 to vector<8x128xf32>
    %287 = arith.addf %286, %285 : vector<8x128xf32>
    %288 = arith.divf %286, %287 : vector<8x128xf32>
    %289 = vector.extract_strided_slice %276 {offsets = [0, 256], sizes = [8, 128], strides = [1, 1]} : vector<8x512xf32> to vector<8x128xf32>
    %290 = math.tanh %289 : vector<8x128xf32>
    %291 = vector.extract_strided_slice %276 {offsets = [0, 384], sizes = [8, 128], strides = [1, 1]} : vector<8x512xf32> to vector<8x128xf32>
    %292 = arith.negf %291 : vector<8x128xf32>
    %293 = math.exp %292 : vector<8x128xf32>
    %cst_88 = arith.constant 1.000000e+00 : f32
    %294 = vector.broadcast %cst_88 : f32 to vector<8x128xf32>
    %295 = arith.addf %294, %293 : vector<8x128xf32>
    %296 = arith.divf %294, %295 : vector<8x128xf32>
    %297 = arith.mulf %288, %262 : vector<8x128xf32>
    %298 = arith.mulf %282, %290 : vector<8x128xf32>
    %299 = arith.addf %297, %298 : vector<8x128xf32>
    %300 = math.tanh %299 : vector<8x128xf32>
    %301 = arith.mulf %296, %300 : vector<8x128xf32>
    %302 = arith.truncf %301 : vector<8x128xf32> to vector<8x128xbf16>
    %303 = arith.index_cast %c7_i32 : i32 to index
    %c0_89 = arith.constant 0 : index
    %c0_90 = arith.constant 0 : index
    %304 = vector.load %arg4[%303, %c0_89, %c0_90] : memref<9x8x128xbf16, #tpu.memory_space<vmem>>, vector<1x8x128xbf16>
    %305 = vector.shape_cast %304 : vector<1x8x128xbf16> to vector<8x128xbf16>
    %306 = vector.shape_cast %302 : vector<8x128xbf16> to vector<1x8x128xbf16>
    tpu.vector_store %arg4[%303, %c0_89, %c0_90], %306 {strides = array<i32>} : memref<9x8x128xbf16, #tpu.memory_space<vmem>>, vector<1x8x128xbf16>,
    %c8_i32 = arith.constant 8 : i32
    %307 = arith.index_cast %c8_i32 : i32 to index
    %c0_91 = arith.constant 0 : index
    %c0_92 = arith.constant 0 : index
    %308 = vector.load %arg5[%307, %c0_91, %c0_92] : memref<9x8x512xf32, #tpu.memory_space<vmem>>, vector<1x8x512xf32>
    %309 = vector.shape_cast %308 : vector<1x8x512xf32> to vector<8x512xf32>
    %310 = arith.truncf %301 : vector<8x128xf32> to vector<8x128xbf16>
    %c0_93 = arith.constant 0 : index
    %c0_94 = arith.constant 0 : index
    %311 = vector.load %arg2[%c0_93, %c0_94] : memref<128x512xbf16, #tpu.memory_space<vmem>>, vector<128x512xbf16>
    %cst_95 = arith.constant dense<0.000000e+00> : vector<8x512xf32>
    %312 = tpu.matmul %310, %311, %cst_95 {dimension_numbers = #tpu.dot_dimension_numbers<[1], [0], [0], [1], [0, 0, 1, 1], [], []>} : vector<8x128xbf16>, vector<128x512xbf16>, vector<8x512xf32> -> vector<8x512xf32>
    %313 = arith.addf %309, %312 : vector<8x512xf32>
    %314 = vector.extract_strided_slice %313 {offsets = [0, 0], sizes = [8, 128], strides = [1, 1]} : vector<8x512xf32> to vector<8x128xf32>
    %315 = arith.negf %314 : vector<8x128xf32>
    %316 = math.exp %315 : vector<8x128xf32>
    %cst_96 = arith.constant 1.000000e+00 : f32
    %317 = vector.broadcast %cst_96 : f32 to vector<8x128xf32>
    %318 = arith.addf %317, %316 : vector<8x128xf32>
    %319 = arith.divf %317, %318 : vector<8x128xf32>
    %320 = vector.extract_strided_slice %313 {offsets = [0, 128], sizes = [8, 128], strides = [1, 1]} : vector<8x512xf32> to vector<8x128xf32>
    %321 = arith.negf %320 : vector<8x128xf32>
    %322 = math.exp %321 : vector<8x128xf32>
    %cst_97 = arith.constant 1.000000e+00 : f32
    %323 = vector.broadcast %cst_97 : f32 to vector<8x128xf32>
    %324 = arith.addf %323, %322 : vector<8x128xf32>
    %325 = arith.divf %323, %324 : vector<8x128xf32>
    %326 = vector.extract_strided_slice %313 {offsets = [0, 256], sizes = [8, 128], strides = [1, 1]} : vector<8x512xf32> to vector<8x128xf32>
    %327 = math.tanh %326 : vector<8x128xf32>
    %328 = vector.extract_strided_slice %313 {offsets = [0, 384], sizes = [8, 128], strides = [1, 1]} : vector<8x512xf32> to vector<8x128xf32>
    %329 = arith.negf %328 : vector<8x128xf32>
    %330 = math.exp %329 : vector<8x128xf32>
    %cst_98 = arith.constant 1.000000e+00 : f32
    %331 = vector.broadcast %cst_98 : f32 to vector<8x128xf32>
    %332 = arith.addf %331, %330 : vector<8x128xf32>
    %333 = arith.divf %331, %332 : vector<8x128xf32>
    %334 = arith.mulf %325, %299 : vector<8x128xf32>
    %335 = arith.mulf %319, %327 : vector<8x128xf32>
    %336 = arith.addf %334, %335 : vector<8x128xf32>
    %337 = math.tanh %336 : vector<8x128xf32>
    %338 = arith.mulf %333, %337 : vector<8x128xf32>
    %339 = arith.truncf %338 : vector<8x128xf32> to vector<8x128xbf16>
    %340 = arith.index_cast %c8_i32 : i32 to index
    %c0_99 = arith.constant 0 : index
    %c0_100 = arith.constant 0 : index
    %341 = vector.load %arg4[%340, %c0_99, %c0_100] : memref<9x8x128xbf16, #tpu.memory_space<vmem>>, vector<1x8x128xbf16>
    %342 = vector.shape_cast %341 : vector<1x8x128xbf16> to vector<8x128xbf16>
    %343 = vector.shape_cast %339 : vector<8x128xbf16> to vector<1x8x128xbf16>
    tpu.vector_store %arg4[%340, %c0_99, %c0_100], %343 {strides = array<i32>} : memref<9x8x128xbf16, #tpu.memory_space<vmem>>, vector<1x8x128xbf16>,
    %c9_i32 = arith.constant 9 : i32
    return
  }
}

</mosaic_0001>

<bundles_post_ra>
// kernel: tpu_custom_call.1
= control target key start
LH: loop header
LB: loop body
LE: loop exit
PB: predicated region body
PF: predicated region fallthrough
CT: control target
= control target key end

     0   :  { %9 = vsyncpa [#allocation4], 0  ;;  %s4752_s0 = inlined_call_operand.hbm [shape: bf16[9,8,128], index: 0, kind: input, shape index: {}]   ;;  %s4753_s1 = inlined_call_operand.hbm [shape: bf16[128,512], index: 1, kind: input, shape index: {}]   ;;  %s4754_s2 = inlined_call_operand.hbm [shape: bf16[128,512], index: 2, kind: input, shape index: {}]   ;;  %s4755_s3 = inlined_call_operand.vmem [shape: f32[1,512], index: 3, kind: input, shape index: {}]   ;;  %s4756_s4 = inlined_call_operand.hbm [shape: bf16[9,8,128], index: 4, kind: output, shape index: {}]  }
   0x1   :  { %10 = vsyncpa [#allocation7], 0 }
   0x2   :  { %11 = vsyncpa [#allocation5], 0  ;;  %s4103_s15 = smov [#allocation6]  }
   0x3   :  { %s29_s16 = sshll.u32 %s4103_s15, 4  ;;  %s30_s16 = int_to_ptr.vmem [resolvable:$true] %s29_s16 }
   0x4   :  { %s4025_s17 = scalar_lea.vmem %s30_s16, 4096  ;;  %p4030_p1 = scmp.lt.s32.totalorder %s30_s16, %s30_s16 }
   0x5   :  { %p4026_p0 = scmp.ne.s32.totalorder %s30_s16, %s4025_s17  ;;  %p4031_p2 = scmp.lt.s32.totalorder %s4025_s17, %s4025_s17 }
   0x7   :  { %p4032_p3 = por %p4031_p2, %p4030_p1 }
   0x9   :  { %p4033_p4 = pnand %p4032_p3, %p4026_p0 }
   0xb   :  { %4036 = shalt.err (!%p4033_p4)
}
   0xc   :  { %s4104_s18 = smov 256   ;;  %s4105_s19 = smov 16  }
   0xd   :  { %35 = dma.hbm_to_vmem [thread:$0]  %s4753_s1, 4096, %s30_s16, [#allocation7], %s4104_s18, %s4104_s18, %s4105_s19  }
   0xe   :  { %s4106_s22 = smov [#allocation3]  }
   0xf   :  { %s17_s23 = sshll.u32 %s4106_s22, 4  ;;  %s18_s23 = int_to_ptr.vmem [resolvable:$true] %s17_s23 }
  0x10   :  { %s4045_s24 = scalar_lea.vmem %s18_s23, 576  ;;  %p4050_p6 = scmp.lt.s32.totalorder %s18_s23, %s18_s23 }
  0x11   :  { %p4046_p5 = scmp.ne.s32.totalorder %s18_s23, %s4045_s24  ;;  %p4051_p7 = scmp.lt.s32.totalorder %s4045_s24, %s4045_s24 }
  0x13   :  { %p4052_p8 = por %p4051_p7, %p4050_p6 }
  0x15   :  { %p4053_p9 = pnand %p4052_p8, %p4046_p5 }
  0x17   :  { %4056 = shalt.err (!%p4053_p9)
}
  0x18   :  { %s4107_s25 = smov 64   ;;  %s4108_s26 = smov 4  }
  0x19   :  { %23 = dma.hbm_to_vmem [thread:$0]  %s4752_s0, 576, %s18_s23, [#allocation4], %s4107_s25, %s4107_s25, %s4108_s26  }
  0x1a   :  { %s4109_s1 = smov [#allocation8]  }
  0x1b   :  { %s41_s29 = sshll.u32 %s4109_s1, 4  ;;  %s42_s29 = int_to_ptr.vmem [resolvable:$true] %s41_s29 }
  0x1c   :  { %s4065_s30 = scalar_lea.vmem %s42_s29, 4096  ;;  %p4070_p11 = scmp.lt.s32.totalorder %s42_s29, %s42_s29 }
  0x1d   :  { %p4066_p10 = scmp.ne.s32.totalorder %s42_s29, %s4065_s30  ;;  %p4071_p12 = scmp.lt.s32.totalorder %s4065_s30, %s4065_s30 }
  0x1f   :  { %p4072_p13 = por %p4071_p12, %p4070_p11 }
  0x21   :  { %p4073_p0 = pnand %p4072_p13, %p4066_p10 }
  0x23   :  { %4076 = shalt.err (!%p4073_p0)
}
  0x24   :  { %47 = dma.hbm_to_vmem [thread:$0]  %s4754_s2, 4096, %s42_s29, [#allocation7], %s4104_s18, %s4104_s18, %s4105_s19  }
  0x25   :  { %4097 = dma.done.wait [#allocation4], 576  }
  0x26   :  { %4098 = vsyncadd [#allocation4], 4294966720 }
  0x27   :  { %4099 = dma.done.wait [#allocation7], 8192  }
  0x28   :  { %4100 = vsyncadd [#allocation7], 4294959104  ;;  %v4757_v0 = vmov 0   ;;  %v3676_v1 = vld [vmem:[#allocation6 + $0xe4] ss:$16 sps:$4 sm:$0xff]   ;;  %v3724_v35 = vld [vmem:[#allocation3] sm:$0xff]  }
  0x29   :  { %343 = vmatprep.mubr.bf16.mxu0 %v4757_v0  ;;  %424 = vmatprep.mubr.bf16.mxu1 %v4757_v0  ;;  %v3678_v2 = vld [vmem:[#allocation6 + $0xec] ss:$16 sps:$4 sm:$0xff]   ;;  %v3680_v3 = vld [vmem:[#allocation6 + $0xe0] ss:$16 sps:$4 sm:$0xff]   ;;  %v3681_v4 = vld [vmem:[#allocation6 + $0xe8] ss:$16 sps:$4 sm:$0xff]  }
  0x2a   :  { %311 = vmatprep.subr.bf16.mxu0 %v3676_v1  ;;  %392 = vmatprep.subr.bf16.mxu1 %v3678_v2  ;;  %v3682_v5 = vld [vmem:[#allocation6 + $0xc4] ss:$16 sps:$4 sm:$0xff]   ;;  %v3684_v6 = vld [vmem:[#allocation6 + $0xcc] ss:$16 sps:$4 sm:$0xff]   ;;  %v3686_v7 = vld [vmem:[#allocation6 + $0xc0] ss:$16 sps:$4 sm:$0xff]  }
  0x2b   :  { %312 = vmatpush1.bf16.msra.mxu0 %v3680_v3  ;;  %393 = vmatpush1.bf16.msra.mxu1 %v3681_v4  ;;  %v3687_v8 = vld [vmem:[#allocation6 + $0xc8] ss:$16 sps:$4 sm:$0xff]   ;;  %v3688_v9 = vld [vmem:[#allocation6 + $0xa4] ss:$16 sps:$4 sm:$0xff]   ;;  %v3690_v10 = vld [vmem:[#allocation6 + $0xac] ss:$16 sps:$4 sm:$0xff]  }
  0x2c   :  { %313 = vmatprep.subr.bf16.mxu0 %v3682_v5  ;;  %394 = vmatprep.subr.bf16.mxu1 %v3684_v6  ;;  %v3692_v11 = vld [vmem:[#allocation6 + $0xa0] ss:$16 sps:$4 sm:$0xff]   ;;  %v3693_v12 = vld [vmem:[#allocation6 + $0xa8] ss:$16 sps:$4 sm:$0xff]   ;;  %v3694_v13 = vld [vmem:[#allocation6 + $0x84] ss:$16 sps:$4 sm:$0xff]  }
  0x2d   :  { %v3696_v14 = vld [vmem:[#allocation6 + $0x8c] ss:$16 sps:$4 sm:$0xff]   ;;  %v3698_v15 = vld [vmem:[#allocation6 + $0x80] ss:$16 sps:$4 sm:$0xff]   ;;  %v3699_v16 = vld [vmem:[#allocation6 + $0x88] ss:$16 sps:$4 sm:$0xff]  }
  0x2e   :  { %v3700_v17 = vld [vmem:[#allocation6 + $0x64] ss:$16 sps:$4 sm:$0xff]   ;;  %v3702_v18 = vld [vmem:[#allocation6 + $0x6c] ss:$16 sps:$4 sm:$0xff]   ;;  %v3704_v19 = vld [vmem:[#allocation6 + $0x60] ss:$16 sps:$4 sm:$0xff]  }
  0x2f   :  { %314 = vmatpush1.bf16.msra.mxu0 %v3686_v7  ;;  %395 = vmatpush1.bf16.msra.mxu1 %v3687_v8  ;;  %v3705_v20 = vld [vmem:[#allocation6 + $0x68] ss:$16 sps:$4 sm:$0xff]   ;;  %v3706_v21 = vld [vmem:[#allocation6 + $0x44] ss:$16 sps:$4 sm:$0xff]   ;;  %v3708_v22 = vld [vmem:[#allocation6 + $0x4c] ss:$16 sps:$4 sm:$0xff]   ;;  %v103_v7 = vlaneseq }
  0x30   :  { %315 = vmatprep.subr.bf16.mxu0 %v3688_v9  ;;  %396 = vmatprep.subr.bf16.mxu1 %v3690_v10  ;;  %v3710_v23 = vld [vmem:[#allocation6 + $0x40] ss:$16 sps:$4 sm:$0xff]   ;;  %v3711_v24 = vld [vmem:[#allocation6 + $0x48] ss:$16 sps:$4 sm:$0xff]   ;;  %v3712_v25 = vld [vmem:[#allocation6 + $0x24] ss:$16 sps:$4 sm:$0xff]  }
  0x31   :  { %v3714_v26 = vld [vmem:[#allocation6 + $0x2c] ss:$16 sps:$4 sm:$0xff]   ;;  %v3716_v27 = vld [vmem:[#allocation6 + $0x20] ss:$16 sps:$4 sm:$0xff]   ;;  %v3717_v28 = vld [vmem:[#allocation6 + $0x28] ss:$16 sps:$4 sm:$0xff]  }
  0x32   :  { %v3718_v29 = vld [vmem:[#allocation6 + $0x4] ss:$16 sps:$4 sm:$0xff]   ;;  %v3720_v30 = vld [vmem:[#allocation6 + $0xc] ss:$16 sps:$4 sm:$0xff]   ;;  %v3722_v31 = vld [vmem:[#allocation6] ss:$16 sps:$4 sm:$0xff]  }
  0x33   :  { %316 = vmatpush1.bf16.msra.mxu0 %v3692_v11  ;;  %397 = vmatpush1.bf16.msra.mxu1 %v3693_v12  ;;  %v3723_v32 = vld [vmem:[#allocation6 + $0x8] ss:$16 sps:$4 sm:$0xff]   ;;  %v4151_v33 = vld [vmem:[#allocation8 + $0xe4] ss:$16 sps:$4 sm:$0xff]   ;;  %v4153_v34 = vld [vmem:[#allocation8 + $0xec] ss:$16 sps:$4 sm:$0xff]  }
  0x34   :  { %317 = vmatprep.subr.bf16.mxu0 %v3694_v13  ;;  %398 = vmatprep.subr.bf16.mxu1 %v3696_v14  ;;  %v4155_v36 = vld [vmem:[#allocation8 + $0xe0] ss:$16 sps:$4 sm:$0xff]   ;;  %v4158_v37 = vld [vmem:[#allocation8 + $0xc4] ss:$16 sps:$4 sm:$0xff]   ;;  %v4161_v38 = vld [vmem:[#allocation8 + $0xe8] ss:$16 sps:$4 sm:$0xff]  }
  0x35   :  { %v4163_v39 = vld [vmem:[#allocation8 + $0xcc] ss:$16 sps:$4 sm:$0xff]   ;;  %v4166_v40 = vld [vmem:[#allocation8 + $0xc0] ss:$16 sps:$4 sm:$0xff]   ;;  %v4171_v41 = vld [vmem:[#allocation8 + $0xa4] ss:$16 sps:$4 sm:$0xff]  }
  0x36   :  { %v4174_v42 = vld [vmem:[#allocation8 + $0xc8] ss:$16 sps:$4 sm:$0xff]   ;;  %v4178_v44 = vld [vmem:[#allocation8 + $0xa0] ss:$16 sps:$4 sm:$0xff]   ;;  %v4181_v45 = vld [vmem:[#allocation8 + $0x84] ss:$16 sps:$4 sm:$0xff]  }
  0x37   :  { %318 = vmatpush1.bf16.msra.mxu0 %v3698_v15  ;;  %399 = vmatpush1.bf16.msra.mxu1 %v3699_v16  ;;  %v3731_v43 = vld [vmem:[#allocation3 + $0x8] sm:$0xff]   ;;  %v4184_v46 = vld [vmem:[#allocation8 + $0xac] ss:$16 sps:$4 sm:$0xff]   ;;  %v4190_v48 = vld [vmem:[#allocation8 + $0x80] ss:$16 sps:$4 sm:$0xff]   ;;  %v104_v8 = vshrl.u32 %v103_v7, 7 }
  0x38   :  { %319 = vmatprep.subr.bf16.mxu0 %v3700_v17  ;;  %400 = vmatprep.subr.bf16.mxu1 %v3702_v18  ;;  %v4186_v47 = vld [vmem:[#allocation8 + $0xa8] ss:$16 sps:$4 sm:$0xff]   ;;  %v4192_v49 = vld [vmem:[#allocation8 + $0x8c] ss:$16 sps:$4 sm:$0xff]   ;;  %v4196_v50 = vld [vmem:[#allocation8 + $0x64] ss:$16 sps:$4 sm:$0xff]  }
  0x39   :  { %v3744_v51 = vld [vmem:[#allocation3 + $0x10] sm:$0xff]   ;;  %v4202_v53 = vld [vmem:[#allocation8 + $0x88] ss:$16 sps:$4 sm:$0xff]   ;;  %v4208_v55 = vld [vmem:[#allocation8 + $0x44] ss:$16 sps:$4 sm:$0xff]   ;;  %v113_v9 = vsub.s32 2, %v104_v8 }
  0x3a   :  { %v4200_v52 = vld [vmem:[#allocation8 + $0x60] ss:$16 sps:$4 sm:$0xff]   ;;  %v4206_v54 = vld [vmem:[#allocation8 + $0x6c] ss:$16 sps:$4 sm:$0xff]   ;;  %v4211_v56 = vld [vmem:[#allocation8 + $0x68] ss:$16 sps:$4 sm:$0xff]  }
  0x3b   :  { %320 = vmatpush1.bf16.msra.mxu0 %v3704_v19  ;;  %401 = vmatpush1.bf16.msra.mxu1 %v3705_v20  ;;  %v4213_v57 = vld [vmem:[#allocation8 + $0x40] ss:$16 sps:$4 sm:$0xff]   ;;  %v4215_v58 = vld [vmem:[#allocation8 + $0x4c] ss:$16 sps:$4 sm:$0xff]   ;;  %v4217_v59 = vld [vmem:[#allocation8 + $0x24] ss:$16 sps:$4 sm:$0xff]  }
  0x3c   :  { %321 = vmatprep.subr.bf16.mxu0 %v3706_v21  ;;  %402 = vmatprep.subr.bf16.mxu1 %v3708_v22  ;;  %v3754_v60 = vld [vmem:[#allocation3 + $0x18] sm:$0xff]   ;;  %v4227_v62 = vld [vmem:[#allocation8 + $0x20] ss:$16 sps:$4 sm:$0xff]   ;;  %v4231_v63 = vld [vmem:[#allocation8 + $0x2c] ss:$16 sps:$4 sm:$0xff]   ;;  %v105_v10 = vsub.s32 0, %v104_v8 }
  0x3d   :  { %v4225_v61 = vld [vmem:[#allocation8 + $0x48] ss:$16 sps:$4 sm:$0xff]   ;;  %v4233_v1 = vld [vmem:[#allocation8 + $0x4] ss:$16 sps:$4 sm:$0xff]   ;;  %v4239_v3 = vld [vmem:[#allocation8] ss:$16 sps:$4 sm:$0xff]  }
  0x3e   :  { %v4237_v2 = vld [vmem:[#allocation8 + $0x28] ss:$16 sps:$4 sm:$0xff]   ;;  %v4241_v4 = vld [vmem:[#allocation8 + $0xc] ss:$16 sps:$4 sm:$0xff]   ;;  %v117_v11 = vsub.s32 3, %v104_v8  ;;  %v109_v16 = vsub.s32 1, %v104_v8 }
  0x3f   :  { %322 = vmatpush1.bf16.msra.mxu0 %v3710_v23  ;;  %403 = vmatpush1.bf16.msra.mxu1 %v3711_v24  ;;  %v3767_v5 = vld [vmem:[#allocation3 + $0x20] ss:$0 sps:$4 sm:$0xff]   ;;  %v4249_v6 = vld [vmem:[#allocation8 + $0x8] ss:$16 sps:$4 sm:$0xff]  }
  0x40   :  { %323 = vmatprep.subr.bf16.mxu0 %v3712_v25  ;;  %404 = vmatprep.subr.bf16.mxu1 %v3714_v26  ;;  %v101_v12 = vld [vmem:[%s4755_s3] sm:$0xf]  ;;  %s4111_s3 = smov [#allocation9]  }
  0x41   :  { %v4302_v15 = vrot.slane %v101_v12, %v113_v9  ;;  %v4308_v19 = vrot.slane %v101_v12, %v105_v10  ;;  %v4310_v20 = vrot.slane %v101_v12, %v117_v11  ;;  %v4312_v23 = vrot.slane %v101_v12, %v109_v16  ;;  %s3302_s7 = sshll.u32 %s4111_s3, 4  ;;  %s3303_s7 = int_to_ptr.vmem [resolvable:$true] %s3302_s7 }
  0x42   :  { %s4077_s8 = scalar_lea.vmem %s3303_s7, 576  ;;  %p4082_p2 = scmp.lt.s32.totalorder %s3303_s7, %s3303_s7 }
  0x43   :  { %324 = vmatpush1.bf16.msra.mxu0 %v3716_v27  ;;  %405 = vmatpush1.bf16.msra.mxu1 %v3717_v28  ;;  %p4078_p1 = scmp.ne.s32.totalorder %s3303_s7, %s4077_s8  ;;  %p4083_p3 = scmp.lt.s32.totalorder %s4077_s8, %s4077_s8 }
  0x44   :  { %325 = vmatprep.subr.bf16.mxu0 %v3718_v29  ;;  %406 = vmatprep.subr.bf16.mxu1 %v3720_v30 }
  0x45   :  { %p4084_p4 = por %p4083_p3, %p4082_p2 }
  0x47   :  { %326 = vmatpush1.bf16.msra.mxu0 %v3722_v31  ;;  %407 = vmatpush1.bf16.msra.mxu1 %v3723_v32  ;;  %p4085_p5 = pnand %p4084_p4, %p4078_p1 }
  0x48   :  { %705 = vmatprep.subr.bf16.mxu0 %v4151_v33  ;;  %746 = vmatprep.subr.bf16.mxu1 %v4153_v34 }
  0x4a   :  { %344 = vmatmul.mubr.bf16.vlgmr.msra.gmra.mxu0 %v3724_v35  ;;  %425 = vmatmul.mubr.bf16.vlgmr.msra.gmra.mxu1 %v3724_v35 }
  0x4b   :  { %706 = vmatpush1.bf16.msra.mxu0 %v4155_v36  ;;  %353 = vmatprep.mubr.bf16.mxu0 %v4757_v0 }
  0x4c   :  { %707 = vmatprep.subr.bf16.mxu0 %v4158_v37  ;;  %434 = vmatprep.mubr.bf16.mxu1 %v4757_v0 }
  0x4d   :  { %747 = vmatpush1.bf16.msra.mxu1 %v4161_v38 }
  0x4e   :  { %748 = vmatprep.subr.bf16.mxu1 %v4163_v39 }
  0x4f   :  { %708 = vmatpush1.bf16.msra.mxu0 %v4166_v40 }
  0x50   :  { %709 = vmatprep.subr.bf16.mxu0 %v4171_v41 }
  0x51   :  { %749 = vmatpush1.bf16.msra.mxu1 %v4174_v42 }
  0x52   :  { %354 = vmatmul.mubr.bf16.gmra.mxu0 %v3731_v43  ;;  %435 = vmatmul.mubr.bf16.gmra.mxu1 %v3731_v43 }
  0x53   :  { %710 = vmatpush1.bf16.msra.mxu0 %v4178_v44  ;;  %363 = vmatprep.mubr.bf16.mxu0 %v4757_v0 }
  0x54   :  { %444 = vmatprep.mubr.bf16.mxu1 %v4757_v0  ;;  %711 = vmatprep.subr.bf16.mxu0 %v4181_v45 }
  0x55   :  { %750 = vmatprep.subr.bf16.mxu1 %v4184_v46 }
  0x56   :  { %751 = vmatpush1.bf16.msra.mxu1 %v4186_v47 }
  0x57   :  { %712 = vmatpush1.bf16.msra.mxu0 %v4190_v48  ;;  %752 = vmatprep.subr.bf16.mxu1 %v4192_v49 }
  0x58   :  { %713 = vmatprep.subr.bf16.mxu0 %v4196_v50 }
  0x5a   :  { %364 = vmatmul.mubr.bf16.gmra.mxu0 %v3744_v51  ;;  %445 = vmatmul.mubr.bf16.gmra.mxu1 %v3744_v51 }
  0x5b   :  { %714 = vmatpush1.bf16.msra.mxu0 %v4200_v52  ;;  %753 = vmatpush1.bf16.msra.mxu1 %v4202_v53 }
  0x5c   :  { %373 = vmatprep.mubr.bf16.mxu0 %v4757_v0  ;;  %454 = vmatprep.mubr.bf16.mxu1 %v4757_v0 }
  0x5d   :  { %754 = vmatprep.subr.bf16.mxu1 %v4206_v54  ;;  %715 = vmatprep.subr.bf16.mxu0 %v4208_v55 }
  0x5f   :  { %755 = vmatpush1.bf16.msra.mxu1 %v4211_v56  ;;  %716 = vmatpush1.bf16.msra.mxu0 %v4213_v57 }
  0x60   :  { %756 = vmatprep.subr.bf16.mxu1 %v4215_v58  ;;  %717 = vmatprep.subr.bf16.mxu0 %v4217_v59 }
  0x62   :  { %374 = vmatmul.mubr.bf16.gmra.mxu0 %v3754_v60  ;;  %455 = vmatmul.mubr.bf16.gmra.mxu1 %v3754_v60 }
  0x63   :  { %757 = vmatpush1.bf16.msra.mxu1 %v4225_v61  ;;  %383 = vmatprep.mubr.bf16.mxu0 %v4757_v0 }
  0x64   :  { %464 = vmatprep.mubr.bf16.mxu1 %v4757_v0  ;;  %718 = vmatpush1.bf16.msra.mxu0 %v4227_v62 }
  0x65   :  { %758 = vmatprep.subr.bf16.mxu1 %v4231_v63  ;;  %719 = vmatprep.subr.bf16.mxu0 %v4233_v1 }
  0x67   :  { %759 = vmatpush1.bf16.msra.mxu1 %v4237_v2 }
  0x68   :  { %720 = vmatpush1.bf16.msra.mxu0 %v4239_v3  ;;  %760 = vmatprep.subr.bf16.mxu1 %v4241_v4 }
  0x69   :  { %1014 = vmatprep.subr.bf16.mxu0 %v4151_v33 }
  0x6a   :  { %384 = vmatmul.mubr.bf16.gmra.mxu0 %v3767_v5  ;;  %465 = vmatmul.mubr.bf16.gmra.mxu1 %v3767_v5 }
  0x6b   :  { %761 = vmatpush1.bf16.msra.mxu1 %v4249_v6  ;;  %737 = vmatprep.mubr.bf16.mxu0 %v4757_v0 }
  0x6c   :  { %778 = vmatprep.mubr.bf16.mxu1 %v4757_v0  ;;  %1055 = vmatprep.subr.bf16.mxu1 %v4153_v34 }
  0x72   :  { %738 = vmatmul.mubr.bf16.vlgmr.msra.gmra.mxu0 %v4757_v0  ;;  %779 = vmatmul.mubr.bf16.vlgmr.msra.gmra.mxu1 %v4757_v0 }
  0x73   :  { %1015 = vmatpush1.bf16.msra.mxu0 %v4155_v36  ;;  %1056 = vmatpush1.bf16.msra.mxu1 %v4161_v38 }
  0x74   :  { %1016 = vmatprep.subr.bf16.mxu0 %v4158_v37  ;;  %1057 = vmatprep.subr.bf16.mxu1 %v4163_v39 }
  0x75   :  { %1046 = vmatprep.mubr.bf16.mxu0 %v4757_v0  ;;  %1087 = vmatprep.mubr.bf16.mxu1 %v4757_v0 }
  0x77   :  { %1017 = vmatpush1.bf16.msra.mxu0 %v4166_v40  ;;  %1058 = vmatpush1.bf16.msra.mxu1 %v4174_v42 }
  0x78   :  { %1018 = vmatprep.subr.bf16.mxu0 %v4171_v41  ;;  %1059 = vmatprep.subr.bf16.mxu1 %v4184_v46 }
  0x7b   :  { %1019 = vmatpush1.bf16.msra.mxu0 %v4178_v44  ;;  %1060 = vmatpush1.bf16.msra.mxu1 %v4186_v47 }
  0x7c   :  { %1020 = vmatprep.subr.bf16.mxu0 %v4181_v45  ;;  %1061 = vmatprep.subr.bf16.mxu1 %v4192_v49 }
  0x7f   :  { %1021 = vmatpush1.bf16.msra.mxu0 %v4190_v48  ;;  %1062 = vmatpush1.bf16.msra.mxu1 %v4202_v53 }
  0x80   :  { %1022 = vmatprep.subr.bf16.mxu0 %v4196_v50  ;;  %1063 = vmatprep.subr.bf16.mxu1 %v4206_v54 }
  0x83   :  { %1023 = vmatpush1.bf16.msra.mxu0 %v4200_v52  ;;  %1064 = vmatpush1.bf16.msra.mxu1 %v4211_v56 }
  0x84   :  { %1024 = vmatprep.subr.bf16.mxu0 %v4208_v55  ;;  %1065 = vmatprep.subr.bf16.mxu1 %v4215_v58 }
  0x87   :  { %1025 = vmatpush1.bf16.msra.mxu0 %v4213_v57  ;;  %1066 = vmatpush1.bf16.msra.mxu1 %v4225_v61 }
  0x88   :  { %1026 = vmatprep.subr.bf16.mxu0 %v4217_v59  ;;  %1067 = vmatprep.subr.bf16.mxu1 %v4231_v63 }
  0x8b   :  { %1027 = vmatpush1.bf16.msra.mxu0 %v4227_v62  ;;  %1068 = vmatpush1.bf16.msra.mxu1 %v4237_v2 }
  0x8c   :  { %1028 = vmatprep.subr.bf16.mxu0 %v4233_v1  ;;  %1069 = vmatprep.subr.bf16.mxu1 %v4241_v4 }
  0x8f   :  { %1029 = vmatpush1.bf16.msra.mxu0 %v4239_v3  ;;  %1070 = vmatpush1.bf16.msra.mxu1 %v4249_v6 }
  0x90   :  { %1324 = vmatprep.subr.bf16.mxu0 %v4151_v33  ;;  %1365 = vmatprep.subr.bf16.mxu1 %v4153_v34 }
 0x10a   :  { %v4298_v13 = vpop.f32.mrf.mxu0  ;;  %v4300_v14 = vpop.f32.mrf.mxu1 }
 0x10c   :  { %v4304_v17 = vpop.f32.mrf.mxu0  ;;  %v4306_v18 = vpop.f32.mrf.mxu1 }
 0x10e   :  { %v349_v21 = vpop.f32.mrf.mxu0  ;;  %v430_v22 = vpop.f32.mrf.mxu1 }
 0x10f   :  { %v4315_v24 = vadd.f32 %v349_v21, %v4308_v19  ;;  %v4318_v25 = vadd.f32 %v430_v22, %v4302_v15 }
 0x110   :  { %v351_v26 = vpop.f32.mrf.mxu0  ;;  %v432_v27 = vpop.f32.mrf.mxu1 }
 0x111   :  { %v4321_v28 = vadd.f32 %v351_v26, %v4312_v23  ;;  %v4324_v29 = vadd.f32 %v432_v27, %v4310_v20 }
 0x112   :  { %v355_v30 = vpop.f32.mrf.mxu0  ;;  %v436_v31 = vpop.f32.mrf.mxu1 }
 0x113   :  { %v4327_v32 = vadd.f32 %v355_v30, %v4308_v19  ;;  %v4330_v35 = vadd.f32 %v436_v31, %v4302_v15 }
 0x114   :  { %v357_v43 = vpop.f32.mrf.mxu0  ;;  %v438_v51 = vpop.f32.mrf.mxu1 }
 0x115   :  { %v4333_v60 = vadd.f32 %v357_v43, %v4312_v23  ;;  %v4336_v5 = vadd.f32 %v438_v51, %v4310_v20 }
 0x116   :  { %v359_v7 = vpop.f32.mrf.mxu0  ;;  %v440_v8 = vpop.f32.mrf.mxu1 }
 0x117   :  { %v4339_v9 = vadd.f32 %v359_v7, %v4308_v19  ;;  %v4342_v10 = vadd.f32 %v440_v8, %v4302_v15 }
 0x118   :  { %v361_v11 = vpop.f32.mrf.mxu0  ;;  %v442_v12 = vpop.f32.mrf.mxu1 }
 0x119   :  { %4759 = vst [vmem:[#allocation13_spill] sm:$0xff] %v4339_v9  ;;  %4760 = vst [vmem:[#allocation14_spill] sm:$0xff] %v4342_v10  ;;  %v4345_v16 = vadd.f32 %v361_v11, %v4312_v23  ;;  %v4348_v21 = vadd.f32 %v442_v12, %v4310_v20  ;;  %v346_v10 = vadd.f32 %v4298_v13, %v4308_v19 }
 0x11a   :  { %v365_v22 = vpop.f32.mrf.mxu0  ;;  %v446_v26 = vpop.f32.mrf.mxu1  ;;  %v429_v13 = vadd.f32 %v4306_v18, %v4310_v20 }
 0x11b   :  { %4761 = vst [vmem:[#allocation15_spill] sm:$0xff] %v4345_v16  ;;  %4762 = vst [vmem:[#allocation16_spill] sm:$0xff] %v4348_v21  ;;  %v4351_v27 = vadd.f32 %v365_v22, %v4308_v19  ;;  %v4354_v30 = vadd.f32 %v446_v26, %v4302_v15 }
 0x11c   :  { %v367_v31 = vpop.f32.mrf.mxu0  ;;  %v448_v43 = vpop.f32.mrf.mxu1 }
 0x11d   :  { %4763 = vst [vmem:[#allocation17_spill] sm:$0xff] %v4351_v27  ;;  %4764 = vst [vmem:[#allocation18_spill] sm:$0xff] %v4354_v30  ;;  %v4357_v51 = vadd.f32 %v367_v31, %v4312_v23  ;;  %v4360_v7 = vadd.f32 %v448_v43, %v4310_v20 }
 0x11e   :  { %v369_v8 = vpop.f32.mrf.mxu0  ;;  %v450_v11 = vpop.f32.mrf.mxu1 }
 0x11f   :  { %4765 = vst [vmem:[#allocation19_spill] sm:$0xff] %v4357_v51  ;;  %4766 = vst [vmem:[#allocation20_spill] sm:$0xff] %v4360_v7  ;;  %v4363_v12 = vadd.f32 %v369_v8, %v4308_v19  ;;  %v4366_v0 = vadd.f32 %v450_v11, %v4302_v15 }
 0x120   :  { %v371_v22 = vpop.f32.mrf.mxu0  ;;  %v452_v27 = vpop.f32.mrf.mxu1 }
 0x121   :  { %4767 = vst [vmem:[#allocation21_spill] sm:$0xff] %v4363_v12  ;;  %4768 = vst [vmem:[#allocation22_spill] sm:$0xff] %v4366_v0  ;;  %v4369_v26 = vadd.f32 %v371_v22, %v4312_v23  ;;  %v4372_v30 = vadd.f32 %v452_v27, %v4310_v20 }
 0x122   :  { %v375_v31 = vpop.f32.mrf.mxu0  ;;  %v456_v51 = vpop.f32.mrf.mxu1 }
 0x123   :  { %4769 = vst [vmem:[#allocation23_spill] sm:$0xff] %v4369_v26  ;;  %4770 = vst [vmem:[#allocation24_spill] sm:$0xff] %v4372_v30  ;;  %v4375_v43 = vadd.f32 %v375_v31, %v4308_v19  ;;  %v4378_v7 = vadd.f32 %v456_v51, %v4302_v15 }
 0x124   :  { %v377_v8 = vpop.f32.mrf.mxu0  ;;  %v458_v12 = vpop.f32.mrf.mxu1 }
 0x125   :  { %4771 = vst [vmem:[#allocation25_spill] sm:$0xff] %v4375_v43  ;;  %4772 = vst [vmem:[#allocation26_spill] sm:$0xff] %v4378_v7  ;;  %v4381_v11 = vadd.f32 %v377_v8, %v4312_v23  ;;  %v4384_v0 = vadd.f32 %v458_v12, %v4310_v20 }
 0x126   :  { %v379_v22 = vpop.f32.mrf.mxu0  ;;  %v460_v26 = vpop.f32.mrf.mxu1 }
 0x127   :  { %4773 = vst [vmem:[#allocation27_spill] sm:$0xff] %v4381_v11  ;;  %4774 = vst [vmem:[#allocation28_spill] sm:$0xff] %v4384_v0  ;;  %v4387_v27 = vadd.f32 %v379_v22, %v4308_v19  ;;  %v4390_v30 = vadd.f32 %v460_v26, %v4302_v15 }
 0x128   :  { %v381_v31 = vpop.f32.mrf.mxu0  ;;  %v462_v43 = vpop.f32.mrf.mxu1 }
 0x129   :  { %4775 = vst [vmem:[#allocation29_spill] sm:$0xff] %v4387_v27  ;;  %4776 = vst [vmem:[#allocation30_spill] sm:$0xff] %v4390_v30  ;;  %v4393_v51 = vadd.f32 %v381_v31, %v4312_v23  ;;  %v4396_v7 = vadd.f32 %v462_v43, %v4310_v20 }
 0x12a   :  { %v385_v8 = vpop.f32.mrf.mxu0  ;;  %v466_v11 = vpop.f32.mrf.mxu1 }
 0x12b   :  { %4777 = vst [vmem:[#allocation31_spill] sm:$0xff] %v4393_v51  ;;  %4778 = vst [vmem:[#allocation32_spill] sm:$0xff] %v4396_v7  ;;  %v4399_v12 = vadd.f32 %v385_v8, %v4308_v19  ;;  %v4402_v0 = vadd.f32 %v466_v11, %v4302_v15  ;;  %v348_v11 = vadd.f32 %v4304_v17, %v4312_v23 }
 0x12c   :  { %v387_v22 = vpop.f32.mrf.mxu0  ;;  %v468_v27 = vpop.f32.mrf.mxu1 }
 0x12d   :  { %4779 = vst [vmem:[#allocation33_spill] sm:$0xff] %v4399_v12  ;;  %4780 = vst [vmem:[#allocation34_spill] sm:$0xff] %v4402_v0  ;;  %v4405_v26 = vadd.f32 %v387_v22, %v4312_v23  ;;  %v4408_v30 = vadd.f32 %v468_v27, %v4310_v20 }
 0x12e   :  { %v389_v31 = vpop.f32.mrf.mxu0  ;;  %v470_v51 = vpop.f32.mrf.mxu1 }
 0x12f   :  { %4781 = vst [vmem:[#allocation35_spill] sm:$0xff] %v4405_v26 }
 0x130   :  { %v390_v43 = vpop.f32.mrf.mxu0  ;;  %v471_v7 = vpop.f32.mrf.mxu1 }
 0x131   :  { %v427_v7 = vadd.f32 %v4300_v14, %v4302_v15 }
 0x132   :  { %v739_v8 = vpop.f32.mrf.mxu0  ;;  %v780_v12 = vpop.f32.mrf.mxu1 }
 0x133   :  { %v787_v0 = vadd.f32 %v739_v8, %v346_v10  ;;  %v789_v10 = vadd.f32 %v780_v12, %v427_v7 }
 0x134   :  { %v741_v21 = vpop.f32.mrf.mxu0  ;;  %v782_v16 = vpop.f32.mrf.mxu1 }
 0x135   :  { %v3384_v22 = vmul.f32 -1.442695, %v787_v0  ;;  %v788_v26 = vadd.f32 %v741_v21, %v348_v11  ;;  %v790_v19 = vadd.f32 %v782_v16, %v429_v13 }
 0x136   :  { %v743_v9 = vpop.f32.mrf.mxu0  ;;  %v784_v27 = vpop.f32.mrf.mxu1 }
 0x137   :  { %3873 = vpow2.f32 %v3384_v22  ;;  %v3385_v31 = vmul.f32 -1.442695, %v788_v26  ;;  %v3386_v17 = vmul.f32 -1.442695, %v790_v19 }
 0x138   :  { %v744_v51 = vpop.f32.mrf.mxu0  ;;  %v785_v43 = vpop.f32.mrf.mxu1 }
 0x139   :  { %3875 = vpow2.f32 %v3385_v31  ;;  %v4782_v51 = vmov 0  }
 0x13a   :  { %3877 = vpow2.f32 %v3386_v17 }
 0x144   :  { %v3874_v23 = vpop.eup %3873 }
 0x145   :  { %v794_v8 = vadd.f32 1.0, %v3874_v23 }
 0x146   :  { %v3876_v0 = vpop.eup %3875 }
 0x147   :  { %3879 = vrcp.f32 %v794_v8  ;;  %v800_v9 = vadd.f32 1.0, %v3876_v0  ;;  %v3878_v21 = vpop.eup %3877 }
 0x148   :  { %3881 = vtanh.f32 %v789_v10  ;;  %v807_v27 = vadd.f32 1.0, %v3878_v21 }
 0x149   :  { %3883 = vrcp.f32 %v800_v9 }
 0x14a   :  { %3885 = vrcp.f32 %v807_v27 }
 0x154   :  { %v3880_v26 = vpop.eup %3879 }
 0x155   :  { %v3882_v11 = vpop.eup %3881 }
 0x156   :  { %v3884_v22 = vpop.eup %3883  ;;  %v811_v20 = vmul.f32 %v3882_v11, %v3880_v26 }
 0x157   :  { %v810_v18 = vmul.f32 0.0, %v3884_v22  ;;  %v3886_v14 = vpop.eup %3885 }
 0x159   :  { %v4418_v16 = vadd.f32 %v811_v20, %v810_v18 }
 0x15b   :  { %3887 = vtanh.f32 %v4418_v16 }
 0x168   :  { %v3888_v15 = vpop.eup %3887 }
 0x169   :  { %v814_v12 = vmul.f32 %v3888_v15, %v3886_v14 }
 0x16b   :  { %v815_v31 = vpack.c.bf16 %v814_v12, %v814_v12 }
 0x16d   :  { %816 = vst [vmem:[#allocation9] sm:$0xf] %v815_v31  ;;  %1047 = vmatmul.mubr.bf16.vlgmr.msra.gmra.mxu0 %v815_v31  ;;  %1088 = vmatmul.mubr.bf16.vlgmr.msra.gmra.mxu1 %v815_v31 }
 0x16e   :  { %1325 = vmatpush1.bf16.msra.mxu0 %v4155_v36  ;;  %1366 = vmatpush1.bf16.msra.mxu1 %v4161_v38 }
 0x16f   :  { %1326 = vmatprep.subr.bf16.mxu0 %v4158_v37  ;;  %1367 = vmatprep.subr.bf16.mxu1 %v4163_v39 }
 0x170   :  { %1356 = vmatprep.mubr.bf16.mxu0 %v4782_v51  ;;  %1397 = vmatprep.mubr.bf16.mxu1 %v4782_v51 }
 0x172   :  { %1327 = vmatpush1.bf16.msra.mxu0 %v4166_v40  ;;  %1368 = vmatpush1.bf16.msra.mxu1 %v4174_v42 }
 0x173   :  { %1328 = vmatprep.subr.bf16.mxu0 %v4171_v41  ;;  %1369 = vmatprep.subr.bf16.mxu1 %v4184_v46 }
 0x176   :  { %1329 = vmatpush1.bf16.msra.mxu0 %v4178_v44  ;;  %1370 = vmatpush1.bf16.msra.mxu1 %v4186_v47 }
 0x177   :  { %1330 = vmatprep.subr.bf16.mxu0 %v4181_v45  ;;  %1371 = vmatprep.subr.bf16.mxu1 %v4192_v49 }
 0x17a   :  { %1331 = vmatpush1.bf16.msra.mxu0 %v4190_v48  ;;  %1372 = vmatpush1.bf16.msra.mxu1 %v4202_v53 }
 0x17b   :  { %1332 = vmatprep.subr.bf16.mxu0 %v4196_v50  ;;  %1373 = vmatprep.subr.bf16.mxu1 %v4206_v54 }
 0x17e   :  { %1333 = vmatpush1.bf16.msra.mxu0 %v4200_v52  ;;  %1374 = vmatpush1.bf16.msra.mxu1 %v4211_v56 }
 0x17f   :  { %1334 = vmatprep.subr.bf16.mxu0 %v4208_v55  ;;  %1375 = vmatprep.subr.bf16.mxu1 %v4215_v58 }
 0x182   :  { %1335 = vmatpush1.bf16.msra.mxu0 %v4213_v57  ;;  %1376 = vmatpush1.bf16.msra.mxu1 %v4225_v61 }
 0x183   :  { %1336 = vmatprep.subr.bf16.mxu0 %v4217_v59  ;;  %1377 = vmatprep.subr.bf16.mxu1 %v4231_v63 }
 0x186   :  { %1337 = vmatpush1.bf16.msra.mxu0 %v4227_v62  ;;  %1378 = vmatpush1.bf16.msra.mxu1 %v4237_v2 }
 0x187   :  { %1338 = vmatprep.subr.bf16.mxu0 %v4233_v1  ;;  %1379 = vmatprep.subr.bf16.mxu1 %v4241_v4 }
 0x18a   :  { %1339 = vmatpush1.bf16.msra.mxu0 %v4239_v3  ;;  %1380 = vmatpush1.bf16.msra.mxu1 %v4249_v6 }
 0x18b   :  { %1634 = vmatprep.subr.bf16.mxu0 %v4151_v33  ;;  %1675 = vmatprep.subr.bf16.mxu1 %v4153_v34 }
 0x22d   :  { %v1048_v43 = vpop.f32.mrf.mxu0  ;;  %v1089_v13 = vpop.f32.mrf.mxu1 }
 0x22e   :  { %v1096_v19 = vadd.f32 %v1048_v43, %v4315_v24  ;;  %v1098_v34 = vadd.f32 %v1089_v13, %v4318_v25 }
 0x22f   :  { %v1050_v7 = vpop.f32.mrf.mxu0  ;;  %v1091_v17 = vpop.f32.mrf.mxu1 }
 0x230   :  { %v3419_v23 = vmul.f32 -1.442695, %v1096_v19  ;;  %v1097_v10 = vadd.f32 %v1050_v7, %v4321_v28  ;;  %v1099_v33 = vadd.f32 %v1091_v17, %v4324_v29  ;;  %v4517_v17 = vld [vmem:[#allocation8 + $0xc4] ss:$16 sps:$4 sm:$0xff]  }
 0x231   :  { %v1052_v8 = vpop.f32.mrf.mxu0  ;;  %v1093_v0 = vpop.f32.mrf.mxu1 }
 0x232   :  { %3889 = vpow2.f32 %v3419_v23  ;;  %v3420_v9 = vmul.f32 -1.442695, %v1097_v10  ;;  %v3421_v11 = vmul.f32 -1.442695, %v1099_v33  ;;  %v4519_v23 = vld [vmem:[#allocation8 + $0xcc] ss:$16 sps:$4 sm:$0xff]  }
 0x233   :  { %v1053_v21 = vpop.f32.mrf.mxu0  ;;  %v1094_v26 = vpop.f32.mrf.mxu1  ;;  %v4521_v10 = vld [vmem:[#allocation8 + $0xc0] ss:$16 sps:$4 sm:$0xff]   ;;  %v4523_v8 = vld [vmem:[#allocation8 + $0xc8] ss:$16 sps:$4 sm:$0xff]   ;;  %v4529_v0 = vld [vmem:[#allocation8 + $0xa4] ss:$16 sps:$4 sm:$0xff]  }
 0x234   :  { %3891 = vpow2.f32 %v3420_v9  ;;  %v4531_v9 = vld [vmem:[#allocation8 + $0xac] ss:$16 sps:$4 sm:$0xff]   ;;  %v4533_v21 = vld [vmem:[#allocation8 + $0xa0] ss:$16 sps:$4 sm:$0xff]   ;;  %v4535_v26 = vld [vmem:[#allocation8 + $0xa8] ss:$16 sps:$4 sm:$0xff]  }
 0x235   :  { %3893 = vtanh.f32 %v1098_v34  ;;  %v4541_v33 = vld [vmem:[#allocation8 + $0x84] ss:$16 sps:$4 sm:$0xff]   ;;  %v4543_v34 = vld [vmem:[#allocation8 + $0x8c] ss:$16 sps:$4 sm:$0xff]  }
 0x236   :  { %3895 = vpow2.f32 %v3421_v11  ;;  %v4545_v11 = vld [vmem:[#allocation8 + $0x80] ss:$16 sps:$4 sm:$0xff]  }
 0x23f   :  { %v3890_v22 = vpop.eup %3889 }
 0x240   :  { %v1103_v27 = vadd.f32 1.0, %v3890_v22  ;;  %v4547_v22 = vld [vmem:[#allocation8 + $0x88] ss:$16 sps:$4 sm:$0xff]  }
 0x241   :  { %v3892_v24 = vpop.eup %3891 }
 0x242   :  { %3897 = vrcp.f32 %v1103_v27  ;;  %v1109_v18 = vadd.f32 1.0, %v3892_v24  ;;  %v3894_v28 = vpop.eup %3893  ;;  %v4551_v27 = vld [vmem:[#allocation8 + $0x64] ss:$16 sps:$4 sm:$0xff]   ;;  %v4553_v24 = vld [vmem:[#allocation8 + $0x6c] ss:$16 sps:$4 sm:$0xff]  }
 0x243   :  { %v3896_v20 = vpop.eup %3895 }
 0x244   :  { %3899 = vrcp.f32 %v1109_v18  ;;  %v1116_v31 = vadd.f32 1.0, %v3896_v20  ;;  %v4557_v18 = vld [vmem:[#allocation8 + $0x60] ss:$16 sps:$4 sm:$0xff]   ;;  %v4563_v20 = vld [vmem:[#allocation8 + $0x44] ss:$16 sps:$4 sm:$0xff]  }
 0x246   :  { %3901 = vrcp.f32 %v1116_v31  ;;  %v4575_v31 = vld [vmem:[#allocation8 + $0x24] ss:$16 sps:$4 sm:$0xff]  }
 0x24f   :  { %v3898_v14 = vpop.eup %3897 }
 0x250   :  { %v1120_v15 = vmul.f32 %v3898_v14, %v3894_v28  ;;  %v4559_v28 = vld [vmem:[#allocation8 + $0x68] ss:$16 sps:$4 sm:$0xff]   ;;  %v4565_v14 = vld [vmem:[#allocation8 + $0x4c] ss:$16 sps:$4 sm:$0xff]  }
 0x251   :  { %v3900_v12 = vpop.eup %3899 }
 0x252   :  { %v1119_v43 = vmul.f32 %v3900_v12, %v4418_v16  ;;  %v4511_v16 = vld [vmem:[#allocation8 + $0xe8] ss:$16 sps:$4 sm:$0xff]  }
 0x253   :  { %v3902_v25 = vpop.eup %3901  ;;  %v4571_v12 = vld [vmem:[#allocation8 + $0x48] ss:$16 sps:$4 sm:$0xff]  }
 0x254   :  { %v4460_v29 = vadd.f32 %v1120_v15, %v1119_v43  ;;  %v4569_v15 = vld [vmem:[#allocation8 + $0x40] ss:$16 sps:$4 sm:$0xff]   ;;  %v4577_v43 = vld [vmem:[#allocation8 + $0x2c] ss:$16 sps:$4 sm:$0xff]  }
 0x256   :  { %3903 = vtanh.f32 %v4460_v29 }
 0x263   :  { %v3904_v13 = vpop.eup %3903 }
 0x264   :  { %v1123_v19 = vmul.f32 %v3904_v13, %v3902_v25  ;;  %v4583_v25 = vld [vmem:[#allocation8 + $0x28] ss:$16 sps:$4 sm:$0xff]   ;;  %v4587_v13 = vld [vmem:[#allocation8 + $0x4] ss:$16 sps:$4 sm:$0xff]  }
 0x266   :  { %v1124_v7 = vpack.c.bf16 %v1123_v19, %v1123_v19  ;;  %v4589_v19 = vld [vmem:[#allocation8 + $0xc] ss:$16 sps:$4 sm:$0xff]  }
 0x268   :  { %1126 = vst [vmem:[#allocation9 + $0x4] sm:$0xf] %v1124_v7  ;;  %1357 = vmatmul.mubr.bf16.vlgmr.msra.gmra.mxu0 %v1124_v7  ;;  %1398 = vmatmul.mubr.bf16.vlgmr.msra.gmra.mxu1 %v1124_v7  ;;  %v4593_v7 = vld [vmem:[#allocation8] ss:$16 sps:$4 sm:$0xff]  }
 0x269   :  { %1635 = vmatpush1.bf16.msra.mxu0 %v4155_v36  ;;  %1676 = vmatpush1.bf16.msra.mxu1 %v4161_v38 }
 0x26a   :  { %1636 = vmatprep.subr.bf16.mxu0 %v4158_v37  ;;  %1677 = vmatprep.subr.bf16.mxu1 %v4163_v39 }
 0x26b   :  { %1666 = vmatprep.mubr.bf16.mxu0 %v4782_v51  ;;  %1707 = vmatprep.mubr.bf16.mxu1 %v4782_v51 }
 0x26d   :  { %1637 = vmatpush1.bf16.msra.mxu0 %v4166_v40  ;;  %1678 = vmatpush1.bf16.msra.mxu1 %v4174_v42 }
 0x26e   :  { %1638 = vmatprep.subr.bf16.mxu0 %v4171_v41  ;;  %1679 = vmatprep.subr.bf16.mxu1 %v4184_v46 }
 0x271   :  { %1639 = vmatpush1.bf16.msra.mxu0 %v4178_v44  ;;  %1680 = vmatpush1.bf16.msra.mxu1 %v4186_v47 }
 0x272   :  { %1640 = vmatprep.subr.bf16.mxu0 %v4181_v45  ;;  %1681 = vmatprep.subr.bf16.mxu1 %v4192_v49 }
 0x275   :  { %1641 = vmatpush1.bf16.msra.mxu0 %v4190_v48  ;;  %1682 = vmatpush1.bf16.msra.mxu1 %v4202_v53 }
 0x276   :  { %1642 = vmatprep.subr.bf16.mxu0 %v4196_v50  ;;  %1683 = vmatprep.subr.bf16.mxu1 %v4206_v54 }
 0x279   :  { %1643 = vmatpush1.bf16.msra.mxu0 %v4200_v52  ;;  %1684 = vmatpush1.bf16.msra.mxu1 %v4211_v56 }
 0x27a   :  { %1644 = vmatprep.subr.bf16.mxu0 %v4208_v55  ;;  %1685 = vmatprep.subr.bf16.mxu1 %v4215_v58 }
 0x27d   :  { %1645 = vmatpush1.bf16.msra.mxu0 %v4213_v57  ;;  %1686 = vmatpush1.bf16.msra.mxu1 %v4225_v61 }
 0x27e   :  { %1646 = vmatprep.subr.bf16.mxu0 %v4217_v59  ;;  %1687 = vmatprep.subr.bf16.mxu1 %v4231_v63 }
 0x281   :  { %1647 = vmatpush1.bf16.msra.mxu0 %v4227_v62  ;;  %1688 = vmatpush1.bf16.msra.mxu1 %v4237_v2 }
 0x282   :  { %1648 = vmatprep.subr.bf16.mxu0 %v4233_v1  ;;  %1689 = vmatprep.subr.bf16.mxu1 %v4241_v4 }
 0x285   :  { %1649 = vmatpush1.bf16.msra.mxu0 %v4239_v3  ;;  %1690 = vmatpush1.bf16.msra.mxu1 %v4249_v6 }
 0x328   :  { %v1358_v36 = vpop.f32.mrf.mxu0  ;;  %v1399_v37 = vpop.f32.mrf.mxu1 }
 0x329   :  { %v1406_v38 = vadd.f32 %v1358_v36, %v4327_v32  ;;  %v1408_v50 = vadd.f32 %v1399_v37, %v4330_v35  ;;  %v4505_v35 = vld [vmem:[#allocation8 + $0xe4] ss:$16 sps:$4 sm:$0xff]   ;;  %v4595_v36 = vld [vmem:[#allocation8 + $0x8] ss:$16 sps:$4 sm:$0xff]  }
 0x32a   :  { %v1360_v39 = vpop.f32.mrf.mxu0  ;;  %v1401_v40 = vpop.f32.mrf.mxu1  ;;  %1944 = vmatprep.subr.bf16.mxu0 %v4505_v35 }
 0x32b   :  { %v3454_v41 = vmul.f32 -1.442695, %v1406_v38  ;;  %v1407_v42 = vadd.f32 %v1360_v39, %v4333_v60  ;;  %v1409_v49 = vadd.f32 %v1401_v40, %v4336_v5  ;;  %v4507_v60 = vld [vmem:[#allocation8 + $0xec] ss:$16 sps:$4 sm:$0xff]   ;;  %v4509_v5 = vld [vmem:[#allocation8 + $0xe0] ss:$16 sps:$4 sm:$0xff]  }
 0x32c   :  { %v1362_v44 = vpop.f32.mrf.mxu0  ;;  %v1403_v45 = vpop.f32.mrf.mxu1  ;;  %1985 = vmatprep.subr.bf16.mxu1 %v4507_v60  ;;  %v4783_v39 = vld [vmem:[#allocation13_spill] sm:$0xff] }
 0x32d   :  { %3905 = vpow2.f32 %v3454_v41  ;;  %v3455_v46 = vmul.f32 -1.442695, %v1407_v42  ;;  %v3456_v52 = vmul.f32 -1.442695, %v1409_v49  ;;  %v4784_v45 = vld [vmem:[#allocation15_spill] sm:$0xff] }
 0x32e   :  { %v1363_v47 = vpop.f32.mrf.mxu0  ;;  %v1404_v48 = vpop.f32.mrf.mxu1 }
 0x32f   :  { %3907 = vpow2.f32 %v3455_v46 }
 0x330   :  { %3909 = vtanh.f32 %v1408_v50 }
 0x331   :  { %3911 = vpow2.f32 %v3456_v52 }
 0x33a   :  { %v3906_v53 = vpop.eup %3905 }
 0x33b   :  { %v1413_v54 = vadd.f32 1.0, %v3906_v53  ;;  %v4785_v53 = vld [vmem:[#allocation16_spill] sm:$0xff] }
 0x33c   :  { %v3908_v55 = vpop.eup %3907 }
 0x33d   :  { %3913 = vrcp.f32 %v1413_v54  ;;  %v1419_v56 = vadd.f32 1.0, %v3908_v55  ;;  %v3910_v57 = vpop.eup %3909  ;;  %v4786_v55 = vld [vmem:[#allocation14_spill] sm:$0xff] }
 0x33e   :  { %v3912_v58 = vpop.eup %3911 }
 0x33f   :  { %3915 = vrcp.f32 %v1419_v56  ;;  %v1426_v63 = vadd.f32 1.0, %v3912_v58 }
 0x341   :  { %3917 = vrcp.f32 %v1426_v63 }
 0x34a   :  { %v3914_v59 = vpop.eup %3913 }
 0x34b   :  { %v1430_v61 = vmul.f32 %v3914_v59, %v3910_v57 }
 0x34c   :  { %v3916_v62 = vpop.eup %3915 }
 0x34d   :  { %v1429_v1 = vmul.f32 %v3916_v62, %v4460_v29  ;;  %v4581_v29 = vld [vmem:[#allocation8 + $0x20] ss:$16 sps:$4 sm:$0xff]  }
 0x34e   :  { %v3918_v3 = vpop.eup %3917 }
 0x34f   :  { %v4500_v2 = vadd.f32 %v1430_v61, %v1429_v1 }
 0x351   :  { %3919 = vtanh.f32 %v4500_v2 }
 0x35e   :  { %v3920_v4 = vpop.eup %3919 }
 0x35f   :  { %v1433_v6 = vmul.f32 %v3920_v4, %v3918_v3 }
 0x361   :  { %v1434_v32 = vpack.c.bf16 %v1433_v6, %v1433_v6 }
 0x363   :  { %1436 = vst [vmem:[#allocation9 + $0x8] sm:$0xf] %v1434_v32  ;;  %1667 = vmatmul.mubr.bf16.vlgmr.msra.gmra.mxu0 %v1434_v32  ;;  %1708 = vmatmul.mubr.bf16.vlgmr.msra.gmra.mxu1 %v1434_v32 }
 0x364   :  { %1976 = vmatprep.mubr.bf16.mxu0 %v4782_v51  ;;  %2017 = vmatprep.mubr.bf16.mxu1 %v4782_v51 }
 0x365   :  { %1945 = vmatpush1.bf16.msra.mxu0 %v4509_v5  ;;  %1986 = vmatpush1.bf16.msra.mxu1 %v4511_v16 }
 0x366   :  { %1946 = vmatprep.subr.bf16.mxu0 %v4517_v17  ;;  %1987 = vmatprep.subr.bf16.mxu1 %v4519_v23 }
 0x369   :  { %1947 = vmatpush1.bf16.msra.mxu0 %v4521_v10  ;;  %1988 = vmatpush1.bf16.msra.mxu1 %v4523_v8 }
 0x36a   :  { %1948 = vmatprep.subr.bf16.mxu0 %v4529_v0  ;;  %1989 = vmatprep.subr.bf16.mxu1 %v4531_v9 }
 0x36d   :  { %1949 = vmatpush1.bf16.msra.mxu0 %v4533_v21  ;;  %1990 = vmatpush1.bf16.msra.mxu1 %v4535_v26 }
 0x36e   :  { %1950 = vmatprep.subr.bf16.mxu0 %v4541_v33  ;;  %1991 = vmatprep.subr.bf16.mxu1 %v4543_v34 }
 0x371   :  { %1951 = vmatpush1.bf16.msra.mxu0 %v4545_v11  ;;  %1992 = vmatpush1.bf16.msra.mxu1 %v4547_v22 }
 0x372   :  { %1952 = vmatprep.subr.bf16.mxu0 %v4551_v27  ;;  %1993 = vmatprep.subr.bf16.mxu1 %v4553_v24 }
 0x375   :  { %1953 = vmatpush1.bf16.msra.mxu0 %v4557_v18  ;;  %1994 = vmatpush1.bf16.msra.mxu1 %v4559_v28 }
 0x376   :  { %1954 = vmatprep.subr.bf16.mxu0 %v4563_v20  ;;  %1995 = vmatprep.subr.bf16.mxu1 %v4565_v14 }
 0x379   :  { %1955 = vmatpush1.bf16.msra.mxu0 %v4569_v15  ;;  %1996 = vmatpush1.bf16.msra.mxu1 %v4571_v12 }
 0x37a   :  { %1956 = vmatprep.subr.bf16.mxu0 %v4575_v31  ;;  %1997 = vmatprep.subr.bf16.mxu1 %v4577_v43 }
 0x37d   :  { %1957 = vmatpush1.bf16.msra.mxu0 %v4581_v29  ;;  %1998 = vmatpush1.bf16.msra.mxu1 %v4583_v25 }
 0x37e   :  { %1958 = vmatprep.subr.bf16.mxu0 %v4587_v13  ;;  %1999 = vmatprep.subr.bf16.mxu1 %v4589_v19 }
 0x381   :  { %1959 = vmatpush1.bf16.msra.mxu0 %v4593_v7  ;;  %2000 = vmatpush1.bf16.msra.mxu1 %v4595_v36 }
 0x382   :  { %2254 = vmatprep.subr.bf16.mxu0 %v4505_v35  ;;  %2295 = vmatprep.subr.bf16.mxu1 %v4507_v60 }
 0x423   :  { %v1668_v37 = vpop.f32.mrf.mxu0  ;;  %v1709_v38 = vpop.f32.mrf.mxu1 }
 0x424   :  { %v1716_v40 = vadd.f32 %v1668_v37, %v4783_v39  ;;  %v1718_v56 = vadd.f32 %v1709_v38, %v4786_v55 }
 0x425   :  { %v1670_v41 = vpop.f32.mrf.mxu0  ;;  %v1711_v42 = vpop.f32.mrf.mxu1 }
 0x426   :  { %v3489_v44 = vmul.f32 -1.442695, %v1716_v40  ;;  %v1717_v46 = vadd.f32 %v1670_v41, %v4784_v45  ;;  %v1719_v54 = vadd.f32 %v1711_v42, %v4785_v53  ;;  %v4787_v45 = vld [vmem:[#allocation17_spill] sm:$0xff] }
 0x427   :  { %v1672_v47 = vpop.f32.mrf.mxu0  ;;  %v1713_v48 = vpop.f32.mrf.mxu1 }
 0x428   :  { %3921 = vpow2.f32 %v3489_v44  ;;  %v3490_v49 = vmul.f32 -1.442695, %v1717_v46  ;;  %v3491_v57 = vmul.f32 -1.442695, %v1719_v54 }
 0x429   :  { %v1673_v50 = vpop.f32.mrf.mxu0  ;;  %v1714_v52 = vpop.f32.mrf.mxu1 }
 0x42a   :  { %3923 = vpow2.f32 %v3490_v49  ;;  %v4788_v50 = vld [vmem:[#allocation19_spill] sm:$0xff] }
 0x42b   :  { %3925 = vtanh.f32 %v1718_v56 }
 0x42c   :  { %3927 = vpow2.f32 %v3491_v57 }
 0x435   :  { %v3922_v58 = vpop.eup %3921 }
 0x436   :  { %v1723_v59 = vadd.f32 1.0, %v3922_v58  ;;  %v4789_v58 = vld [vmem:[#allocation20_spill] sm:$0xff] }
 0x437   :  { %v3924_v61 = vpop.eup %3923 }
 0x438   :  { %3929 = vrcp.f32 %v1723_v59  ;;  %v1729_v62 = vadd.f32 1.0, %v3924_v61  ;;  %v3926_v63 = vpop.eup %3925  ;;  %v4790_v61 = vld [vmem:[#allocation18_spill] sm:$0xff] }
 0x439   :  { %v3928_v1 = vpop.eup %3927 }
 0x43a   :  { %3931 = vrcp.f32 %v1729_v62  ;;  %v1736_v32 = vadd.f32 1.0, %v3928_v1 }
 0x43c   :  { %3933 = vrcp.f32 %v1736_v32 }
 0x445   :  { %v3930_v3 = vpop.eup %3929 }
 0x446   :  { %v1740_v4 = vmul.f32 %v3930_v3, %v3926_v63 }
 0x447   :  { %v3932_v6 = vpop.eup %3931 }
 0x448   :  { %v1739_v37 = vmul.f32 %v3932_v6, %v4500_v2 }
 0x449   :  { %v3934_v38 = vpop.eup %3933 }
 0x44a   :  { %v4608_v39 = vadd.f32 %v1740_v4, %v1739_v37 }
 0x44c   :  { %3935 = vtanh.f32 %v4608_v39 }
 0x459   :  { %v3936_v40 = vpop.eup %3935 }
 0x45a   :  { %v1743_v41 = vmul.f32 %v3936_v40, %v3934_v38 }
 0x45c   :  { %v1744_v42 = vpack.c.bf16 %v1743_v41, %v1743_v41 }
 0x45e   :  { %1746 = vst [vmem:[#allocation9 + $0xc] sm:$0xf] %v1744_v42  ;;  %1977 = vmatmul.mubr.bf16.vlgmr.msra.gmra.mxu0 %v1744_v42  ;;  %2018 = vmatmul.mubr.bf16.vlgmr.msra.gmra.mxu1 %v1744_v42 }
 0x45f   :  { %2255 = vmatpush1.bf16.msra.mxu0 %v4509_v5  ;;  %2296 = vmatpush1.bf16.msra.mxu1 %v4511_v16 }
 0x460   :  { %2256 = vmatprep.subr.bf16.mxu0 %v4517_v17  ;;  %2297 = vmatprep.subr.bf16.mxu1 %v4519_v23 }
 0x461   :  { %2286 = vmatprep.mubr.bf16.mxu0 %v4782_v51  ;;  %2327 = vmatprep.mubr.bf16.mxu1 %v4782_v51 }
 0x463   :  { %2257 = vmatpush1.bf16.msra.mxu0 %v4521_v10  ;;  %2298 = vmatpush1.bf16.msra.mxu1 %v4523_v8 }
 0x464   :  { %2258 = vmatprep.subr.bf16.mxu0 %v4529_v0  ;;  %2299 = vmatprep.subr.bf16.mxu1 %v4531_v9 }
 0x467   :  { %2259 = vmatpush1.bf16.msra.mxu0 %v4533_v21  ;;  %2300 = vmatpush1.bf16.msra.mxu1 %v4535_v26 }
 0x468   :  { %2260 = vmatprep.subr.bf16.mxu0 %v4541_v33  ;;  %2301 = vmatprep.subr.bf16.mxu1 %v4543_v34 }
 0x46b   :  { %2261 = vmatpush1.bf16.msra.mxu0 %v4545_v11  ;;  %2302 = vmatpush1.bf16.msra.mxu1 %v4547_v22 }
 0x46c   :  { %2262 = vmatprep.subr.bf16.mxu0 %v4551_v27  ;;  %2303 = vmatprep.subr.bf16.mxu1 %v4553_v24 }
 0x46f   :  { %2263 = vmatpush1.bf16.msra.mxu0 %v4557_v18  ;;  %2304 = vmatpush1.bf16.msra.mxu1 %v4559_v28 }
 0x470   :  { %2264 = vmatprep.subr.bf16.mxu0 %v4563_v20  ;;  %2305 = vmatprep.subr.bf16.mxu1 %v4565_v14 }
 0x473   :  { %2265 = vmatpush1.bf16.msra.mxu0 %v4569_v15  ;;  %2306 = vmatpush1.bf16.msra.mxu1 %v4571_v12 }
 0x474   :  { %2266 = vmatprep.subr.bf16.mxu0 %v4575_v31  ;;  %2307 = vmatprep.subr.bf16.mxu1 %v4577_v43 }
 0x477   :  { %2267 = vmatpush1.bf16.msra.mxu0 %v4581_v29  ;;  %2308 = vmatpush1.bf16.msra.mxu1 %v4583_v25 }
 0x478   :  { %2268 = vmatprep.subr.bf16.mxu0 %v4587_v13  ;;  %2309 = vmatprep.subr.bf16.mxu1 %v4589_v19 }
 0x47b   :  { %2269 = vmatpush1.bf16.msra.mxu0 %v4593_v7  ;;  %2310 = vmatpush1.bf16.msra.mxu1 %v4595_v36 }
 0x47c   :  { %2564 = vmatprep.subr.bf16.mxu0 %v4505_v35  ;;  %2605 = vmatprep.subr.bf16.mxu1 %v4507_v60 }
 0x51e   :  { %v1978_v2 = vpop.f32.mrf.mxu0  ;;  %v2019_v44 = vpop.f32.mrf.mxu1 }
 0x51f   :  { %v2026_v46 = vadd.f32 %v1978_v2, %v4787_v45  ;;  %v2028_v62 = vadd.f32 %v2019_v44, %v4790_v61 }
 0x520   :  { %v1980_v47 = vpop.f32.mrf.mxu0  ;;  %v2021_v48 = vpop.f32.mrf.mxu1 }
 0x521   :  { %v3524_v49 = vmul.f32 -1.442695, %v2026_v46  ;;  %v2027_v52 = vadd.f32 %v1980_v47, %v4788_v50  ;;  %v2029_v59 = vadd.f32 %v2021_v48, %v4789_v58  ;;  %v4791_v50 = vld [vmem:[#allocation21_spill] sm:$0xff] }
 0x522   :  { %v1982_v53 = vpop.f32.mrf.mxu0  ;;  %v2023_v54 = vpop.f32.mrf.mxu1 }
 0x523   :  { %3937 = vpow2.f32 %v3524_v49  ;;  %v3525_v55 = vmul.f32 -1.442695, %v2027_v52  ;;  %v3526_v63 = vmul.f32 -1.442695, %v2029_v59 }
 0x524   :  { %v1983_v56 = vpop.f32.mrf.mxu0  ;;  %v2024_v57 = vpop.f32.mrf.mxu1 }
 0x525   :  { %3939 = vpow2.f32 %v3525_v55  ;;  %v4792_v56 = vld [vmem:[#allocation23_spill] sm:$0xff] }
 0x526   :  { %3941 = vtanh.f32 %v2028_v62 }
 0x527   :  { %3943 = vpow2.f32 %v3526_v63 }
 0x530   :  { %v3938_v1 = vpop.eup %3937 }
 0x531   :  { %v2033_v3 = vadd.f32 1.0, %v3938_v1  ;;  %v4793_v1 = vld [vmem:[#allocation24_spill] sm:$0xff] }
 0x532   :  { %v3940_v4 = vpop.eup %3939 }
 0x533   :  { %3945 = vrcp.f32 %v2033_v3  ;;  %v2039_v6 = vadd.f32 1.0, %v3940_v4  ;;  %v3942_v32 = vpop.eup %3941  ;;  %v4794_v3 = vld [vmem:[#allocation22_spill] sm:$0xff] }
 0x534   :  { %v3944_v37 = vpop.eup %3943 }
 0x535   :  { %3947 = vrcp.f32 %v2039_v6  ;;  %v2046_v42 = vadd.f32 1.0, %v3944_v37 }
 0x537   :  { %3949 = vrcp.f32 %v2046_v42 }
 0x540   :  { %v3946_v38 = vpop.eup %3945 }
 0x541   :  { %v2050_v40 = vmul.f32 %v3946_v38, %v3942_v32 }
 0x542   :  { %v3948_v41 = vpop.eup %3947 }
 0x543   :  { %v2049_v2 = vmul.f32 %v3948_v41, %v4608_v39 }
 0x544   :  { %v3950_v44 = vpop.eup %3949 }
 0x545   :  { %v4650_v45 = vadd.f32 %v2050_v40, %v2049_v2 }
 0x547   :  { %3951 = vtanh.f32 %v4650_v45 }
 0x554   :  { %v3952_v46 = vpop.eup %3951 }
 0x555   :  { %v2053_v47 = vmul.f32 %v3952_v46, %v3950_v44 }
 0x557   :  { %v2054_v48 = vpack.c.bf16 %v2053_v47, %v2053_v47 }
 0x559   :  { %2056 = vst [vmem:[#allocation9 + $0x10] sm:$0xf] %v2054_v48  ;;  %2287 = vmatmul.mubr.bf16.vlgmr.msra.gmra.mxu0 %v2054_v48  ;;  %2328 = vmatmul.mubr.bf16.vlgmr.msra.gmra.mxu1 %v2054_v48 }
 0x55a   :  { %2565 = vmatpush1.bf16.msra.mxu0 %v4509_v5  ;;  %2606 = vmatpush1.bf16.msra.mxu1 %v4511_v16 }
 0x55b   :  { %2566 = vmatprep.subr.bf16.mxu0 %v4517_v17  ;;  %2607 = vmatprep.subr.bf16.mxu1 %v4519_v23 }
 0x55c   :  { %2596 = vmatprep.mubr.bf16.mxu0 %v4782_v51  ;;  %2637 = vmatprep.mubr.bf16.mxu1 %v4782_v51 }
 0x55e   :  { %2567 = vmatpush1.bf16.msra.mxu0 %v4521_v10  ;;  %2608 = vmatpush1.bf16.msra.mxu1 %v4523_v8 }
 0x55f   :  { %2568 = vmatprep.subr.bf16.mxu0 %v4529_v0  ;;  %2609 = vmatprep.subr.bf16.mxu1 %v4531_v9 }
 0x562   :  { %2569 = vmatpush1.bf16.msra.mxu0 %v4533_v21  ;;  %2610 = vmatpush1.bf16.msra.mxu1 %v4535_v26 }
 0x563   :  { %2570 = vmatprep.subr.bf16.mxu0 %v4541_v33  ;;  %2611 = vmatprep.subr.bf16.mxu1 %v4543_v34 }
 0x566   :  { %2571 = vmatpush1.bf16.msra.mxu0 %v4545_v11  ;;  %2612 = vmatpush1.bf16.msra.mxu1 %v4547_v22 }
 0x567   :  { %2572 = vmatprep.subr.bf16.mxu0 %v4551_v27  ;;  %2613 = vmatprep.subr.bf16.mxu1 %v4553_v24 }
 0x56a   :  { %2573 = vmatpush1.bf16.msra.mxu0 %v4557_v18  ;;  %2614 = vmatpush1.bf16.msra.mxu1 %v4559_v28 }
 0x56b   :  { %2574 = vmatprep.subr.bf16.mxu0 %v4563_v20  ;;  %2615 = vmatprep.subr.bf16.mxu1 %v4565_v14 }
 0x56e   :  { %2575 = vmatpush1.bf16.msra.mxu0 %v4569_v15  ;;  %2616 = vmatpush1.bf16.msra.mxu1 %v4571_v12 }
 0x56f   :  { %2576 = vmatprep.subr.bf16.mxu0 %v4575_v31  ;;  %2617 = vmatprep.subr.bf16.mxu1 %v4577_v43 }
 0x572   :  { %2577 = vmatpush1.bf16.msra.mxu0 %v4581_v29  ;;  %2618 = vmatpush1.bf16.msra.mxu1 %v4583_v25 }
 0x573   :  { %2578 = vmatprep.subr.bf16.mxu0 %v4587_v13  ;;  %2619 = vmatprep.subr.bf16.mxu1 %v4589_v19 }
 0x576   :  { %2579 = vmatpush1.bf16.msra.mxu0 %v4593_v7  ;;  %2620 = vmatpush1.bf16.msra.mxu1 %v4595_v36 }
 0x577   :  { %2874 = vmatprep.subr.bf16.mxu0 %v4505_v35  ;;  %2915 = vmatprep.subr.bf16.mxu1 %v4507_v60 }
 0x619   :  { %v2288_v39 = vpop.f32.mrf.mxu0  ;;  %v2329_v49 = vpop.f32.mrf.mxu1 }
 0x61a   :  { %v2336_v52 = vadd.f32 %v2288_v39, %v4791_v50  ;;  %v2338_v60 = vadd.f32 %v2329_v49, %v4794_v3  ;;  %v3839_v3 = vld [vmem:[#allocation8 + $0xa4] ss:$16 sps:$4 sm:$0xff]  }
 0x61b   :  { %v2290_v53 = vpop.f32.mrf.mxu0  ;;  %v2331_v54 = vpop.f32.mrf.mxu1 }
 0x61c   :  { %v3559_v55 = vmul.f32 -1.442695, %v2336_v52  ;;  %v2337_v57 = vadd.f32 %v2290_v53, %v4792_v56  ;;  %v2339_v35 = vadd.f32 %v2331_v54, %v4793_v1  ;;  %v3831_v1 = vld [vmem:[#allocation8 + $0xc0] ss:$16 sps:$4 sm:$0xff]  }
 0x61d   :  { %v2292_v58 = vpop.f32.mrf.mxu0  ;;  %v2333_v59 = vpop.f32.mrf.mxu1 }
 0x61e   :  { %3953 = vpow2.f32 %v3559_v55  ;;  %v3560_v61 = vmul.f32 -1.442695, %v2337_v57  ;;  %v3561_v4 = vmul.f32 -1.442695, %v2339_v35  ;;  %v3827_v57 = vld [vmem:[#allocation8 + $0xe4] ss:$16 sps:$4 sm:$0xff]  }
 0x61f   :  { %v2293_v62 = vpop.f32.mrf.mxu0  ;;  %v2334_v63 = vpop.f32.mrf.mxu1  ;;  %v3830_v58 = vld [vmem:[#allocation8 + $0xec] ss:$16 sps:$4 sm:$0xff]   ;;  %v3825_v59 = vld [vmem:[#allocation8 + $0xe0] ss:$16 sps:$4 sm:$0xff]   ;;  %v3834_v35 = vld [vmem:[#allocation8 + $0xc8] ss:$16 sps:$4 sm:$0xff]  }
 0x620   :  { %3955 = vpow2.f32 %v3560_v61  ;;  %v3828_v61 = vld [vmem:[#allocation8 + $0xe8] ss:$16 sps:$4 sm:$0xff]   ;;  %v3833_v62 = vld [vmem:[#allocation8 + $0xc4] ss:$16 sps:$4 sm:$0xff]   ;;  %v3836_v63 = vld [vmem:[#allocation8 + $0xcc] ss:$16 sps:$4 sm:$0xff]  }
 0x621   :  { %3957 = vtanh.f32 %v2338_v60  ;;  %v3842_v60 = vld [vmem:[#allocation8 + $0xac] ss:$16 sps:$4 sm:$0xff]  }
 0x622   :  { %3959 = vpow2.f32 %v3561_v4  ;;  %v3837_v4 = vld [vmem:[#allocation8 + $0xa0] ss:$16 sps:$4 sm:$0xff]  }
 0x62b   :  { %v3954_v6 = vpop.eup %3953 }
 0x62c   :  { %v2343_v32 = vadd.f32 1.0, %v3954_v6  ;;  %v3845_v6 = vld [vmem:[#allocation8 + $0x84] ss:$16 sps:$4 sm:$0xff]  }
 0x62d   :  { %v3956_v37 = vpop.eup %3955 }
 0x62e   :  { %3961 = vrcp.f32 %v2343_v32  ;;  %v2349_v38 = vadd.f32 1.0, %v3956_v37  ;;  %v3958_v40 = vpop.eup %3957  ;;  %v3848_v32 = vld [vmem:[#allocation8 + $0x8c] ss:$16 sps:$4 sm:$0xff]   ;;  %v3843_v37 = vld [vmem:[#allocation8 + $0x80] ss:$16 sps:$4 sm:$0xff]  }
 0x62f   :  { %v3960_v41 = vpop.eup %3959 }
 0x630   :  { %3963 = vrcp.f32 %v2349_v38  ;;  %v2356_v46 = vadd.f32 1.0, %v3960_v41  ;;  %v3846_v38 = vld [vmem:[#allocation8 + $0x88] ss:$16 sps:$4 sm:$0xff]   ;;  %v3854_v41 = vld [vmem:[#allocation8 + $0x6c] ss:$16 sps:$4 sm:$0xff]  }
 0x632   :  { %3965 = vrcp.f32 %v2356_v46  ;;  %v3860_v46 = vld [vmem:[#allocation8 + $0x4c] ss:$16 sps:$4 sm:$0xff]  }
 0x63b   :  { %v3962_v42 = vpop.eup %3961 }
 0x63c   :  { %v2360_v2 = vmul.f32 %v3962_v42, %v3958_v40  ;;  %v3851_v40 = vld [vmem:[#allocation8 + $0x64] ss:$16 sps:$4 sm:$0xff]   ;;  %v3849_v42 = vld [vmem:[#allocation8 + $0x60] ss:$16 sps:$4 sm:$0xff]  }
 0x63d   :  { %v3964_v44 = vpop.eup %3963 }
 0x63e   :  { %v2359_v47 = vmul.f32 %v3964_v44, %v4650_v45  ;;  %v3857_v44 = vld [vmem:[#allocation8 + $0x44] ss:$16 sps:$4 sm:$0xff]  }
 0x63f   :  { %v3966_v39 = vpop.eup %3965 }
 0x640   :  { %v4692_v48 = vadd.f32 %v2360_v2, %v2359_v47  ;;  %v3852_v2 = vld [vmem:[#allocation8 + $0x68] ss:$16 sps:$4 sm:$0xff]   ;;  %v3855_v47 = vld [vmem:[#allocation8 + $0x40] ss:$16 sps:$4 sm:$0xff]  }
 0x642   :  { %3967 = vtanh.f32 %v4692_v48 }
 0x64f   :  { %v3968_v49 = vpop.eup %3967 }
 0x650   :  { %v2363_v50 = vmul.f32 %v3968_v49, %v3966_v39  ;;  %v3863_v39 = vld [vmem:[#allocation8 + $0x24] ss:$16 sps:$4 sm:$0xff]   ;;  %v3866_v49 = vld [vmem:[#allocation8 + $0x2c] ss:$16 sps:$4 sm:$0xff]  }
 0x652   :  { %v2364_v52 = vpack.c.bf16 %v2363_v50, %v2363_v50  ;;  %v3861_v50 = vld [vmem:[#allocation8 + $0x20] ss:$16 sps:$4 sm:$0xff]  }
 0x654   :  { %2366 = vst [vmem:[#allocation9 + $0x14] sm:$0xf] %v2364_v52  ;;  %2597 = vmatmul.mubr.bf16.vlgmr.msra.gmra.mxu0 %v2364_v52  ;;  %2638 = vmatmul.mubr.bf16.vlgmr.msra.gmra.mxu1 %v2364_v52  ;;  %v3864_v52 = vld [vmem:[#allocation8 + $0x28] ss:$16 sps:$4 sm:$0xff]  }
 0x655   :  { %2875 = vmatpush1.bf16.msra.mxu0 %v4509_v5  ;;  %2916 = vmatpush1.bf16.msra.mxu1 %v4511_v16 }
 0x656   :  { %2876 = vmatprep.subr.bf16.mxu0 %v4517_v17  ;;  %2917 = vmatprep.subr.bf16.mxu1 %v4519_v23  ;;  %v4795_v17 = vld [vmem:[#allocation25_spill] sm:$0xff] }
 0x657   :  { %2906 = vmatprep.mubr.bf16.mxu0 %v4782_v51  ;;  %2947 = vmatprep.mubr.bf16.mxu1 %v4782_v51 }
 0x659   :  { %2877 = vmatpush1.bf16.msra.mxu0 %v4521_v10  ;;  %2918 = vmatpush1.bf16.msra.mxu1 %v4523_v8 }
 0x65a   :  { %2878 = vmatprep.subr.bf16.mxu0 %v4529_v0  ;;  %2919 = vmatprep.subr.bf16.mxu1 %v4531_v9  ;;  %v4796_v9 = vld [vmem:[#allocation27_spill] sm:$0xff] }
 0x65d   :  { %2879 = vmatpush1.bf16.msra.mxu0 %v4533_v21  ;;  %2920 = vmatpush1.bf16.msra.mxu1 %v4535_v26 }
 0x65e   :  { %2880 = vmatprep.subr.bf16.mxu0 %v4541_v33  ;;  %2921 = vmatprep.subr.bf16.mxu1 %v4543_v34 }
 0x661   :  { %2881 = vmatpush1.bf16.msra.mxu0 %v4545_v11  ;;  %2922 = vmatpush1.bf16.msra.mxu1 %v4547_v22 }
 0x662   :  { %2882 = vmatprep.subr.bf16.mxu0 %v4551_v27  ;;  %2923 = vmatprep.subr.bf16.mxu1 %v4553_v24  ;;  %v4797_v27 = vld [vmem:[#allocation28_spill] sm:$0xff] }
 0x665   :  { %2883 = vmatpush1.bf16.msra.mxu0 %v4557_v18  ;;  %2924 = vmatpush1.bf16.msra.mxu1 %v4559_v28  ;;  %v4798_v18 = vld [vmem:[#allocation26_spill] sm:$0xff] }
 0x666   :  { %2884 = vmatprep.subr.bf16.mxu0 %v4563_v20  ;;  %2925 = vmatprep.subr.bf16.mxu1 %v4565_v14 }
 0x669   :  { %2885 = vmatpush1.bf16.msra.mxu0 %v4569_v15  ;;  %2926 = vmatpush1.bf16.msra.mxu1 %v4571_v12 }
 0x66a   :  { %2886 = vmatprep.subr.bf16.mxu0 %v4575_v31  ;;  %2927 = vmatprep.subr.bf16.mxu1 %v4577_v43 }
 0x66d   :  { %2887 = vmatpush1.bf16.msra.mxu0 %v4581_v29  ;;  %2928 = vmatpush1.bf16.msra.mxu1 %v4583_v25 }
 0x66e   :  { %2888 = vmatprep.subr.bf16.mxu0 %v4587_v13  ;;  %2929 = vmatprep.subr.bf16.mxu1 %v4589_v19 }
 0x671   :  { %2889 = vmatpush1.bf16.msra.mxu0 %v4593_v7  ;;  %2930 = vmatpush1.bf16.msra.mxu1 %v4595_v36 }
 0x672   :  { %3184 = vmatprep.subr.bf16.mxu0 %v3827_v57  ;;  %3225 = vmatprep.subr.bf16.mxu1 %v3830_v58 }
 0x714   :  { %v2598_v5 = vpop.f32.mrf.mxu0  ;;  %v2639_v16 = vpop.f32.mrf.mxu1 }
 0x715   :  { %v2646_v23 = vadd.f32 %v2598_v5, %v4795_v17  ;;  %v2648_v28 = vadd.f32 %v2639_v16, %v4798_v18  ;;  %v3869_v5 = vld [vmem:[#allocation8 + $0x4] ss:$16 sps:$4 sm:$0xff]   ;;  %v3872_v16 = vld [vmem:[#allocation8 + $0xc] ss:$16 sps:$4 sm:$0xff]   ;;  %v3867_v17 = vld [vmem:[#allocation8] ss:$16 sps:$4 sm:$0xff]  }
 0x716   :  { %v2600_v10 = vpop.f32.mrf.mxu0  ;;  %v2641_v8 = vpop.f32.mrf.mxu1 }
 0x717   :  { %v3594_v0 = vmul.f32 -1.442695, %v2646_v23  ;;  %v2647_v21 = vadd.f32 %v2600_v10, %v4796_v9  ;;  %v2649_v24 = vadd.f32 %v2641_v8, %v4797_v27  ;;  %v3870_v23 = vld [vmem:[#allocation8 + $0x8] ss:$16 sps:$4 sm:$0xff]  }
 0x718   :  { %v2602_v26 = vpop.f32.mrf.mxu0  ;;  %v2643_v33 = vpop.f32.mrf.mxu1 }
 0x719   :  { %3969 = vpow2.f32 %v3594_v0  ;;  %v3595_v34 = vmul.f32 -1.442695, %v2647_v21  ;;  %v3596_v20 = vmul.f32 -1.442695, %v2649_v24  ;;  %v4799_v0 = vld [vmem:[#allocation29_spill] sm:$0xff] }
 0x71a   :  { %v2603_v11 = vpop.f32.mrf.mxu0  ;;  %v2644_v22 = vpop.f32.mrf.mxu1 }
 0x71b   :  { %3971 = vpow2.f32 %v3595_v34  ;;  %v4800_v34 = vld [vmem:[#allocation31_spill] sm:$0xff] }
 0x71c   :  { %3973 = vtanh.f32 %v2648_v28 }
 0x71d   :  { %3975 = vpow2.f32 %v3596_v20  ;;  %v4801_v20 = vld [vmem:[#allocation32_spill] sm:$0xff] }
 0x726   :  { %v3970_v14 = vpop.eup %3969 }
 0x727   :  { %v2653_v15 = vadd.f32 1.0, %v3970_v14 }
 0x728   :  { %v3972_v12 = vpop.eup %3971 }
 0x729   :  { %3977 = vrcp.f32 %v2653_v15  ;;  %v2659_v31 = vadd.f32 1.0, %v3972_v12  ;;  %v3974_v43 = vpop.eup %3973  ;;  %v4802_v15 = vld [vmem:[#allocation30_spill] sm:$0xff] }
 0x72a   :  { %v3976_v29 = vpop.eup %3975 }
 0x72b   :  { %3979 = vrcp.f32 %v2659_v31  ;;  %v2666_v7 = vadd.f32 1.0, %v3976_v29 }
 0x72d   :  { %3981 = vrcp.f32 %v2666_v7 }
 0x736   :  { %v3978_v25 = vpop.eup %3977 }
 0x737   :  { %v2670_v13 = vmul.f32 %v3978_v25, %v3974_v43 }
 0x738   :  { %v3980_v19 = vpop.eup %3979 }
 0x739   :  { %v2669_v36 = vmul.f32 %v3980_v19, %v4692_v48  ;;  %v3858_v48 = vld [vmem:[#allocation8 + $0x48] ss:$16 sps:$4 sm:$0xff]  }
 0x73a   :  { %v3982_v53 = vpop.eup %3981 }
 0x73b   :  { %v4732_v45 = vadd.f32 %v2670_v13, %v2669_v36 }
 0x73d   :  { %3983 = vtanh.f32 %v4732_v45 }
 0x74a   :  { %v3984_v54 = vpop.eup %3983 }
 0x74b   :  { %v2673_v55 = vmul.f32 %v3984_v54, %v3982_v53 }
 0x74d   :  { %v2674_v56 = vpack.c.bf16 %v2673_v55, %v2673_v55 }
 0x74f   :  { %2676 = vst [vmem:[#allocation9 + $0x18] sm:$0xf] %v2674_v56  ;;  %2907 = vmatmul.mubr.bf16.vlgmr.msra.gmra.mxu0 %v2674_v56  ;;  %2948 = vmatmul.mubr.bf16.vlgmr.msra.gmra.mxu1 %v2674_v56 }
 0x750   :  { %3216 = vmatprep.mubr.bf16.mxu0 %v4782_v51  ;;  %3257 = vmatprep.mubr.bf16.mxu1 %v4782_v51  ;;  %v3840_v51 = vld [vmem:[#allocation8 + $0xa8] ss:$16 sps:$4 sm:$0xff]  }
 0x751   :  { %3185 = vmatpush1.bf16.msra.mxu0 %v3825_v59  ;;  %3226 = vmatpush1.bf16.msra.mxu1 %v3828_v61 }
 0x752   :  { %3186 = vmatprep.subr.bf16.mxu0 %v3833_v62  ;;  %3227 = vmatprep.subr.bf16.mxu1 %v3836_v63 }
 0x755   :  { %3187 = vmatpush1.bf16.msra.mxu0 %v3831_v1  ;;  %3228 = vmatpush1.bf16.msra.mxu1 %v3834_v35  ;;  %v4803_v35 = vld [vmem:[#allocation33_spill] sm:$0xff] }
 0x756   :  { %3188 = vmatprep.subr.bf16.mxu0 %v3839_v3  ;;  %3229 = vmatprep.subr.bf16.mxu1 %v3842_v60 }
 0x759   :  { %3189 = vmatpush1.bf16.msra.mxu0 %v3837_v4  ;;  %3230 = vmatpush1.bf16.msra.mxu1 %v3840_v51 }
 0x75a   :  { %3190 = vmatprep.subr.bf16.mxu0 %v3845_v6  ;;  %3231 = vmatprep.subr.bf16.mxu1 %v3848_v32  ;;  %v4804_v6 = vld [vmem:[#allocation35_spill] sm:$0xff] }
 0x75d   :  { %3191 = vmatpush1.bf16.msra.mxu0 %v3843_v37  ;;  %3232 = vmatpush1.bf16.msra.mxu1 %v3846_v38 }
 0x75e   :  { %3192 = vmatprep.subr.bf16.mxu0 %v3851_v40  ;;  %3233 = vmatprep.subr.bf16.mxu1 %v3854_v41 }
 0x761   :  { %3193 = vmatpush1.bf16.msra.mxu0 %v3849_v42  ;;  %3234 = vmatpush1.bf16.msra.mxu1 %v3852_v2  ;;  %v4805_v2 = vld [vmem:[#allocation34_spill] sm:$0xff] }
 0x762   :  { %3194 = vmatprep.subr.bf16.mxu0 %v3857_v44  ;;  %3235 = vmatprep.subr.bf16.mxu1 %v3860_v46 }
 0x765   :  { %3195 = vmatpush1.bf16.msra.mxu0 %v3855_v47  ;;  %3236 = vmatpush1.bf16.msra.mxu1 %v3858_v48 }
 0x766   :  { %3196 = vmatprep.subr.bf16.mxu0 %v3863_v39  ;;  %3237 = vmatprep.subr.bf16.mxu1 %v3866_v49 }
 0x769   :  { %3197 = vmatpush1.bf16.msra.mxu0 %v3861_v50  ;;  %3238 = vmatpush1.bf16.msra.mxu1 %v3864_v52 }
 0x76a   :  { %3198 = vmatprep.subr.bf16.mxu0 %v3869_v5  ;;  %3239 = vmatprep.subr.bf16.mxu1 %v3872_v16 }
 0x76d   :  { %3199 = vmatpush1.bf16.msra.mxu0 %v3867_v17  ;;  %3240 = vmatpush1.bf16.msra.mxu1 %v3870_v23 }
 0x80f   :  { %v2908_v10 = vpop.f32.mrf.mxu0  ;;  %v2949_v8 = vpop.f32.mrf.mxu1 }
 0x810   :  { %v2956_v9 = vadd.f32 %v2908_v10, %v4799_v0  ;;  %v2958_v12 = vadd.f32 %v2949_v8, %v4802_v15 }
 0x811   :  { %v2910_v21 = vpop.f32.mrf.mxu0  ;;  %v2951_v26 = vpop.f32.mrf.mxu1 }
 0x812   :  { %v3629_v33 = vmul.f32 -1.442695, %v2956_v9  ;;  %v2957_v11 = vadd.f32 %v2910_v21, %v4800_v34  ;;  %v2959_v14 = vadd.f32 %v2951_v26, %v4801_v20 }
 0x813   :  { %v2912_v22 = vpop.f32.mrf.mxu0  ;;  %v2953_v27 = vpop.f32.mrf.mxu1 }
 0x814   :  { %3985 = vpow2.f32 %v3629_v33  ;;  %v3630_v24 = vmul.f32 -1.442695, %v2957_v11  ;;  %v3631_v31 = vmul.f32 -1.442695, %v2959_v14 }
 0x815   :  { %v2913_v18 = vpop.f32.mrf.mxu0  ;;  %v2954_v28 = vpop.f32.mrf.mxu1 }
 0x816   :  { %3987 = vpow2.f32 %v3630_v24 }
 0x817   :  { %3989 = vtanh.f32 %v2958_v12 }
 0x818   :  { %3991 = vpow2.f32 %v3631_v31 }
 0x821   :  { %v3986_v43 = vpop.eup %3985 }
 0x822   :  { %v2963_v29 = vadd.f32 1.0, %v3986_v43 }
 0x823   :  { %v3988_v25 = vpop.eup %3987 }
 0x824   :  { %3993 = vrcp.f32 %v2963_v29  ;;  %v2969_v13 = vadd.f32 1.0, %v3988_v25  ;;  %v3990_v19 = vpop.eup %3989 }
 0x825   :  { %v3992_v7 = vpop.eup %3991 }
 0x826   :  { %3995 = vrcp.f32 %v2969_v13  ;;  %v2976_v55 = vadd.f32 1.0, %v3992_v7 }
 0x828   :  { %3997 = vrcp.f32 %v2976_v55 }
 0x831   :  { %v3994_v36 = vpop.eup %3993 }
 0x832   :  { %v2980_v53 = vmul.f32 %v3994_v36, %v3990_v19 }
 0x833   :  { %v3996_v54 = vpop.eup %3995 }
 0x834   :  { %v2979_v56 = vmul.f32 %v3996_v54, %v4732_v45 }
 0x835   :  { %v3998_v58 = vpop.eup %3997 }
 0x836   :  { %v2981_v57 = vadd.f32 %v2980_v53, %v2979_v56 }
 0x838   :  { %3999 = vtanh.f32 %v2981_v57 }
 0x845   :  { %v4000_v59 = vpop.eup %3999 }
 0x846   :  { %v2983_v61 = vmul.f32 %v4000_v59, %v3998_v58 }
 0x848   :  { %v2984_v62 = vpack.c.bf16 %v2983_v61, %v2983_v61 }
 0x84a   :  { %2986 = vst [vmem:[#allocation9 + $0x1c] sm:$0xf] %v2984_v62  ;;  %3217 = vmatmul.mubr.bf16.vlgmr.msra.gmra.mxu0 %v2984_v62  ;;  %3258 = vmatmul.mubr.bf16.vlgmr.msra.gmra.mxu1 %v2984_v62 }
 0x90a   :  { %v3218_v63 = vpop.f32.mrf.mxu0  ;;  %v3259_v1 = vpop.f32.mrf.mxu1 }
 0x90b   :  { %v3266_v3 = vadd.f32 %v3218_v63, %v4803_v35  ;;  %v3268_v44 = vadd.f32 %v3259_v1, %v4805_v2 }
 0x90c   :  { %v3220_v60 = vpop.f32.mrf.mxu0  ;;  %v3261_v4 = vpop.f32.mrf.mxu1 }
 0x90d   :  { %v3664_v51 = vmul.f32 -1.442695, %v3266_v3  ;;  %v3267_v32 = vadd.f32 %v3220_v60, %v4804_v6  ;;  %v3269_v42 = vadd.f32 %v3261_v4, %v4408_v30 }
 0x90e   :  { %v3222_v45 = vpop.f32.mrf.mxu0  ;;  %v3263_v37 = vpop.f32.mrf.mxu1 }
 0x90f   :  { %4001 = vpow2.f32 %v3664_v51  ;;  %v3665_v38 = vmul.f32 -1.442695, %v3267_v32  ;;  %v3666_v46 = vmul.f32 -1.442695, %v3269_v42 }
 0x910   :  { %v3223_v40 = vpop.f32.mrf.mxu0  ;;  %v3264_v41 = vpop.f32.mrf.mxu1 }
 0x911   :  { %4003 = vpow2.f32 %v3665_v38 }
 0x912   :  { %4005 = vtanh.f32 %v3268_v44 }
 0x913   :  { %4007 = vpow2.f32 %v3666_v46 }
 0x91c   :  { %v4002_v47 = vpop.eup %4001 }
 0x91d   :  { %v3273_v48 = vadd.f32 1.0, %v4002_v47 }
 0x91e   :  { %v4004_v39 = vpop.eup %4003 }
 0x91f   :  { %4009 = vrcp.f32 %v3273_v48  ;;  %v3279_v49 = vadd.f32 1.0, %v4004_v39  ;;  %v4006_v50 = vpop.eup %4005 }
 0x920   :  { %v4008_v52 = vpop.eup %4007 }
 0x921   :  { %4011 = vrcp.f32 %v3279_v49  ;;  %v3286_v23 = vadd.f32 1.0, %v4008_v52 }
 0x923   :  { %4013 = vrcp.f32 %v3286_v23 }
 0x92c   :  { %v4010_v5 = vpop.eup %4009 }
 0x92d   :  { %v3290_v16 = vmul.f32 %v4010_v5, %v4006_v50 }
 0x92e   :  { %v4012_v17 = vpop.eup %4011 }
 0x92f   :  { %v3289_v10 = vmul.f32 %v4012_v17, %v2981_v57 }
 0x930   :  { %v4014_v30 = vpop.eup %4013 }
 0x931   :  { %v3291_v8 = vadd.f32 %v3290_v16, %v3289_v10 }
 0x933   :  { %4015 = vtanh.f32 %v3291_v8 }
 0x940   :  { %v4016_v0 = vpop.eup %4015 }
 0x941   :  { %v3293_v9 = vmul.f32 %v4016_v0, %v4014_v30 }
 0x943   :  { %v3294_v21 = vpack.c.bf16 %v3293_v9, %v3293_v9 }
 0x945   :  { %3296 = vst [vmem:[#allocation9 + $0x20] sm:$0xf] %v3294_v21 }
 0x946   :  { %4088 = shalt.err (!%p4085_p5)
}
 0x947   :  { %3308 = dma.vmem_to_hbm [thread:$0]  %s3303_s7, 576, %s4756_s4, [#allocation5], %s4107_s25, %s4107_s25, %s4108_s26  }
 0x948   :  { %4101 = dma.done.wait [#allocation5], 576  }
 0x949   :  { %4102 = vsyncadd [#allocation5], 4294966720 }
 0x94a   :  { %3312 = vsyncpa [#allocation4], 1 }
 0x94b   :  { %3313 = vsyncpa [#allocation7], 1 }
 0x94c   :  { %3314 = vsyncpa [#allocation5], 1 }

</bundles_post_ra>
